<compile_context>
chip_gen: v7x
topology: tpu7x:2x2x1
jax: 0.10.0
libtpu: 0.0.40
codegen_flags: <defaults>
</compile_context>

<pallas_src>
import functools

import jax
import jax.numpy as jnp
from jax.experimental import pallas as pl
from jax.experimental.pallas import tpu as pltpu

BN_EPS = 1e-5
PRELU_SLOPE = 0.25  # nn.PReLU() default shared slope


def _round_up(x, m):
    return (x + m - 1) // m * m


# -----------------------------------------------------------------------------
# Pallas kernels
# -----------------------------------------------------------------------------
def _gemm_scale_act_kernel(x_ref, w_ref, scale_ref, shift_ref, o_ref, *,
                           neg_slope):
    """o = act(scale * (x @ w) + shift); act = ReLU (slope 0) or PReLU."""
    acc = jnp.dot(x_ref[...], w_ref[...], preferred_element_type=jnp.float32)
    y = acc * scale_ref[...] + shift_ref[...]
    if neg_slope == 0.0:
        y = jnp.maximum(y, 0.0)                     # ReLU
    else:
        y = jnp.where(y >= 0.0, y, neg_slope * y)   # PReLU (shared scalar slope)
    o_ref[...] = y.astype(o_ref.dtype)


def _maxpool_reduce_kernel(w_ref, o_ref):
    # w_ref: (1, k*k, L) stacked window views; o_ref: (1, L)
    o_ref[...] = jnp.max(w_ref[...], axis=1)


# -----------------------------------------------------------------------------
# Wrappers
# -----------------------------------------------------------------------------
def gemm_scale_act(x, w, scale, shift, neg_slope=0.0, tm=512):
    """act(scale * (x @ w) + shift) with per-output-column scale/shift."""
    M, K = x.shape
    N = w.shape[1]
    tm = min(tm, _round_up(M, 8))
    Mp = _round_up(M, tm)
    if Mp != M:
        x = jnp.pad(x, ((0, Mp - M), (0, 0)))
    kernel = functools.partial(_gemm_scale_act_kernel,
                               neg_slope=float(neg_slope))
    out = pl.pallas_call(
        kernel,
        out_shape=jax.ShapeDtypeStruct((Mp, N), x.dtype),
        grid=(Mp // tm,),
        in_specs=[
            pl.BlockSpec((tm, K), lambda m: (m, 0)),
            pl.BlockSpec((K, N), lambda m: (0, 0)),
            pl.BlockSpec((1, N), lambda m: (0, 0)),
            pl.BlockSpec((1, N), lambda m: (0, 0)),
        ],
        out_specs=pl.BlockSpec((tm, N), lambda m: (m, 0)),
        compiler_params=pltpu.CompilerParams(
            dimension_semantics=("parallel",)),
    )(x, w, scale.reshape(1, N), shift.reshape(1, N))
    return out[:M]


def conv_bn_relu(x_nhwc, w_oihw, scale, shift, stride, pad):
    """Conv2d + (folded, inference-mode) BatchNorm + ReLU via im2col GEMM."""
    B, H, W, Cin = x_nhwc.shape
    Cout, _, k, _ = w_oihw.shape
    xp = jnp.pad(x_nhwc, ((0, 0), (pad, pad), (pad, pad), (0, 0)))
    Hp, Wp = H + 2 * pad, W + 2 * pad
    Ho = (Hp - k) // stride + 1
    Wo = (Wp - k) // stride + 1
    cols = []
    for dy in range(k):
        for dx in range(k):
            cols.append(jax.lax.slice(
                xp,
                (0, dy, dx, 0),
                (B, dy + (Ho - 1) * stride + 1,
                 dx + (Wo - 1) * stride + 1, Cin),
                (1, stride, stride, 1)))
    patches = jnp.concatenate(cols, axis=-1).reshape(B * Ho * Wo, k * k * Cin)
    # (Cout, Cin, kh, kw) -> (kh, kw, Cin, Cout) -> (kh*kw*Cin, Cout) to match
    # the patch channel ordering built above.
    w_mat = jnp.transpose(w_oihw, (2, 3, 1, 0)).reshape(k * k * Cin, Cout)
    out = gemm_scale_act(patches, w_mat, scale, shift, neg_slope=0.0)
    return out.reshape(B, Ho, Wo, Cout)


def maxpool2d(x_nhwc, k, stride):
    """MaxPool2d(kernel=k, stride=stride, padding=0); reduction in Pallas."""
    B, H, W, C = x_nhwc.shape
    Ho = (H - k) // stride + 1
    Wo = (W - k) // stride + 1
    views = []
    for dy in range(k):
        for dx in range(k):
            views.append(jax.lax.slice(
                x_nhwc,
                (0, dy, dx, 0),
                (B, dy + (Ho - 1) * stride + 1,
                 dx + (Wo - 1) * stride + 1, C),
                (1, stride, stride, 1)))
    L = Ho * Wo * C
    win = jnp.stack(views, axis=1).reshape(B, k * k, L)
    out = pl.pallas_call(
        _maxpool_reduce_kernel,
        out_shape=jax.ShapeDtypeStruct((B, L), x_nhwc.dtype),
        grid=(B,),
        in_specs=[pl.BlockSpec((1, k * k, L), lambda b: (b, 0, 0))],
        out_specs=pl.BlockSpec((1, L), lambda b: (b, 0)),
        compiler_params=pltpu.CompilerParams(
            dimension_semantics=("parallel",)),
    )(win)
    return out.reshape(B, Ho, Wo, C)


# -----------------------------------------------------------------------------
# Baseline model
# -----------------------------------------------------------------------------
CONV_CFGS = [
    # (inC, outC, kernel, stride, pad, pool=(k, stride) or None)
    (6, 24, 7, 1, 3, (2, 2)),
    (24, 64, 5, 1, 2, (3, 2)),
    (64, 96, 3, 1, 0, None),
    (96, 96, 1, 1, 0, None),
    (96, 64, 3, 2, 0, (3, 2)),
]


def init_params(key):
    params = {"convs": []}
    for (cin, cout, k, _stride, _pad, _pool) in CONV_CFGS:
        key, kw, kb, kg, kbt, km, kv = jax.random.split(key, 7)
        fan_in = cin * k * k
        params["convs"].append(dict(
            w=jax.random.normal(kw, (cout, cin, k, k), jnp.float32)
            / jnp.sqrt(float(fan_in)),
            b=0.01 * jax.random.normal(kb, (cout,), jnp.float32),
            gamma=1.0 + 0.1 * jax.random.normal(kg, (cout,), jnp.float32),
            beta=0.1 * jax.random.normal(kbt, (cout,), jnp.float32),
            mean=0.1 * jax.random.normal(km, (cout,), jnp.float32),
            var=0.9 + 0.1 * jnp.abs(jax.random.normal(kv, (cout,), jnp.float32)),
        ))
    key, k1, k2, k3, k4 = jax.random.split(key, 5)
    params["fc1_w"] = jax.random.normal(k1, (1024, 256), jnp.float32) / 16.0
    params["fc1_b"] = 0.01 * jax.random.normal(k2, (1024,), jnp.float32)
    params["fc2_w"] = jax.random.normal(k3, (2, 1024), jnp.float32) / 32.0
    params["fc2_b"] = 0.01 * jax.random.normal(k4, (2,), jnp.float32)
    return params


def baseline_forward(xa, xb, params):
    """Pallas forward pass of `Baseline`."""
    # TODO(synk): BatchNorm2d uses inference semantics (running stats folded
    # into per-channel scale/shift); train-mode batch statistics are not
    # computed in-kernel.
    x = jnp.concatenate([xa, xb], axis=1)           # (B, 6, H, W)
    x = jnp.transpose(x, (0, 2, 3, 1))              # NHWC for lane-dense channels
    for cfg, p in zip(CONV_CFGS, params["convs"]):
        _, _, _k, stride, pad, pool = cfg
        scale = p["gamma"] / jnp.sqrt(p["var"] + BN_EPS)
        shift = p["beta"] + scale * (p["b"] - p["mean"])
        x = conv_bn_relu(x, p["w"], scale, shift, stride, pad)
        if pool is not None:
            x = maxpool2d(x, pool[0], pool[1])
    B = x.shape[0]
    # torch.flatten on NCHW => flatten in (C, H, W) order.
    f = jnp.transpose(x, (0, 3, 1, 2)).reshape(B, -1)
    h = gemm_scale_act(f, params["fc1_w"].T,
                       jnp.ones((1024,), jnp.float32), params["fc1_b"],
                       neg_slope=0.0)
    o = gemm_scale_act(h, params["fc2_w"].T,
                       jnp.ones((2,), jnp.float32), params["fc2_b"],
                       neg_slope=PRELU_SLOPE)
    return o


def baseline_ref(xa, xb, params):
    """Pure-JAX reference (matches the PyTorch module in eval mode)."""
    x = jnp.concatenate([xa, xb], axis=1)
    for cfg, p in zip(CONV_CFGS, params["convs"]):
        _, _, _k, stride, pad, pool = cfg
        x = jax.lax.conv_general_dilated(
            x, p["w"], (stride, stride), [(pad, pad), (pad, pad)],
            dimension_numbers=("NCHW", "OIHW", "NCHW"),
            precision=jax.lax.Precision.HIGHEST)
        x = x + p["b"][None, :, None, None]
        x = (p["gamma"][None, :, None, None]
             * (x - p["mean"][None, :, None, None])
             / jnp.sqrt(p["var"][None, :, None, None] + BN_EPS)
             + p["beta"][None, :, None, None])
        x = jnp.maximum(x, 0.0)
        if pool is not None:
            pk, ps = pool
            x = jax.lax.reduce_window(x, -jnp.inf, jax.lax.max,
                                      (1, 1, pk, pk), (1, 1, ps, ps), "VALID")
    f = x.reshape(x.shape[0], -1)
    h = jnp.maximum(
        jnp.dot(f, params["fc1_w"].T, precision=jax.lax.Precision.HIGHEST)
        + params["fc1_b"], 0.0)
    o = (jnp.dot(h, params["fc2_w"].T, precision=jax.lax.Precision.HIGHEST)
         + params["fc2_b"])
    return jnp.where(o >= 0.0, o, PRELU_SLOPE * o)


if __name__ == "__main__":
    key = jax.random.PRNGKey(0)
    kp, ka, kxb = jax.random.split(key, 3)
    params = init_params(kp)

    # 64x64 spatial input is what the module implies: the final feature map
    # must flatten to 256 = 64 channels * 2 * 2 for the fc stack.
    B, H, W = 2, 64, 64
    xa = jax.random.normal(ka, (B, 3, H, W), jnp.float32)
    xb = jax.random.normal(kxb, (B, 3, H, W), jnp.float32)

    out = jax.block_until_ready(baseline_forward(xa, xb, params))
    assert out.shape == (B, 2), out.shape

    ref = baseline_ref(xa, xb, params)
    err = float(jnp.max(jnp.abs(out - ref)))
    assert jnp.allclose(out, ref, atol=2e-2, rtol=2e-2), err
    print("KERNEL_OK")
</pallas_src>

<mosaic_0001>
module attributes {stable_mosaic.version = 11 : i64} {
  func.func @_gemm_scale_act_kernel(%arg0: i32, %arg1: memref<512x294xf32, #tpu.memory_space<vmem>>, %arg2: memref<294x24xf32, #tpu.memory_space<vmem>>, %arg3: memref<1x24xf32, #tpu.memory_space<vmem>>, %arg4: memref<1x24xf32, #tpu.memory_space<vmem>>, %arg5: memref<512x24xf32, #tpu.memory_space<vmem>>) attributes {dimension_semantics = [#tpu.dimension_semantics<parallel>], iteration_bounds = array<i64: 16>, scalar_prefetch = 0 : i64, scratch_operands = 0 : i64, tpu.core_type = #tpu.core_type<tc>, window_params = [{transform_indices = @transform_0, window_bounds = array<i64: 512, 294>}, {pipeline_mode = #tpu.pipeline_mode<synchronous>, transform_indices = @transform_1, window_bounds = array<i64: 294, 24>}, {pipeline_mode = #tpu.pipeline_mode<synchronous>, transform_indices = @transform_2, window_bounds = array<i64: 1, 24>}, {pipeline_mode = #tpu.pipeline_mode<synchronous>, transform_indices = @transform_3, window_bounds = array<i64: 1, 24>}, {transform_indices = @transform_4, window_bounds = array<i64: 512, 24>}]} {
    %c0 = arith.constant 0 : index
    %c0_0 = arith.constant 0 : index
    %0 = vector.load %arg1[%c0, %c0_0] : memref<512x294xf32, #tpu.memory_space<vmem>>, vector<512x294xf32>
    %c0_1 = arith.constant 0 : index
    %c0_2 = arith.constant 0 : index
    %1 = vector.load %arg2[%c0_1, %c0_2] : memref<294x24xf32, #tpu.memory_space<vmem>>, vector<294x24xf32>
    %cst = arith.constant dense<0.000000e+00> : vector<512x24xf32>
    %2 = tpu.matmul %0, %1, %cst {dimension_numbers = #tpu.dot_dimension_numbers<[1], [0], [0], [1], [0, 0, 1, 1], [], []>} : vector<512x294xf32>, vector<294x24xf32>, vector<512x24xf32> -> vector<512x24xf32>
    %c0_3 = arith.constant 0 : index
    %c0_4 = arith.constant 0 : index
    %3 = vector.load %arg3[%c0_3, %c0_4] : memref<1x24xf32, #tpu.memory_space<vmem>>, vector<1x24xf32>
    %4 = vector.broadcast %3 : vector<1x24xf32> to vector<512x24xf32>
    %5 = arith.mulf %2, %4 : vector<512x24xf32>
    %c0_5 = arith.constant 0 : index
    %c0_6 = arith.constant 0 : index
    %6 = vector.load %arg4[%c0_5, %c0_6] : memref<1x24xf32, #tpu.memory_space<vmem>>, vector<1x24xf32>
    %7 = vector.broadcast %6 : vector<1x24xf32> to vector<512x24xf32>
    %8 = arith.addf %5, %7 : vector<512x24xf32>
    %cst_7 = arith.constant 0.000000e+00 : f32
    %9 = vector.broadcast %cst_7 : f32 to vector<512x24xf32>
    %10 = arith.maximumf %8, %9 : vector<512x24xf32>
    %c0_8 = arith.constant 0 : index
    %c0_9 = arith.constant 0 : index
    %11 = vector.load %arg5[%c0_8, %c0_9] : memref<512x24xf32, #tpu.memory_space<vmem>>, vector<512x24xf32>
    tpu.vector_store %arg5[%c0_8, %c0_9], %10 {strides = array<i32>} : memref<512x24xf32, #tpu.memory_space<vmem>>, vector<512x24xf32>,
    return
  }
  func.func @transform_0(%arg0: i32) -> (i32, i32) {
    %c0_i32 = arith.constant 0 : i32
    %c0_i32_0 = arith.constant 0 : i32
    return %arg0, %c0_i32 : i32, i32
  }
  func.func @transform_1(%arg0: i32) -> (i32, i32) {
    %c0_i32 = arith.constant 0 : i32
    %c0_i32_0 = arith.constant 0 : i32
    %c0_i32_1 = arith.constant 0 : i32
    return %c0_i32, %c0_i32_0 : i32, i32
  }
  func.func @transform_2(%arg0: i32) -> (i32, i32) {
    %c0_i32 = arith.constant 0 : i32
    %c0_i32_0 = arith.constant 0 : i32
    %c0_i32_1 = arith.constant 0 : i32
    return %c0_i32, %c0_i32_0 : i32, i32
  }
  func.func @transform_3(%arg0: i32) -> (i32, i32) {
    %c0_i32 = arith.constant 0 : i32
    %c0_i32_0 = arith.constant 0 : i32
    %c0_i32_1 = arith.constant 0 : i32
    return %c0_i32, %c0_i32_0 : i32, i32
  }
  func.func @transform_4(%arg0: i32) -> (i32, i32) {
    %c0_i32 = arith.constant 0 : i32
    %c0_i32_0 = arith.constant 0 : i32
    return %arg0, %c0_i32 : i32, i32
  }
}

</mosaic_0001>

<bundles_post_ra>
// kernel: tpu_custom_call.1
= control target key start
LH: loop header
LB: loop body
LE: loop exit
PB: predicated region body
PF: predicated region fallthrough
CT: control target
= control target key end

     0   :  { %s2112_s15 = smov 0   ;;  %s2936_s0 = inlined_call_operand.vmem [shape: f32[8192,294], index: 0, kind: input, shape index: {}]   ;;  %s2937_s1 = inlined_call_operand.vmem [shape: f32[294,24], index: 1, kind: input, shape index: {}]   ;;  %s2938_s2 = inlined_call_operand.vmem [shape: f32[1,24], index: 2, kind: input, shape index: {}]   ;;  %s2939_s3 = inlined_call_operand.vmem [shape: f32[1,24], index: 3, kind: input, shape index: {}]   ;;  %s2940_s4 = inlined_call_operand.vmem [shape: f32[8192,24], index: 4, kind: output, shape index: {}]  }
   0x1 LB: > { %s1727_s16 = sadd.s32 4294967295, %s2084_s15   ;;  %p1731_p0 = scmp.ge.s32.totalorder %s2084_s15, 1  ;;  %s2084_s15 = sphi %s2112_s15, %s14_s15  }
   0x2   : > { %p164_p1 = scmp.lt.s32.totalorder %s2084_s15, 17 }
   0x4   : > { %p165_p2 = pnand %p1731_p0, %p164_p1 }
   0x5   : > { %v396_v0 = vld [vmem:[%s2937_s1] sm:$0xff] (!%p165_p2)  ;;  %v397_v1 = vld [vmem:[%s2937_s1 + $0x8] sm:$0xff] (!%p165_p2)  ;;  %v398_v2 = vld [vmem:[%s2937_s1 + $0x10] sm:$0xff] (!%p165_p2)  ;;  %s1732_s23 = sshll.u32 (!%p165_p2), %s1727_s16, 6  ;;  %v2086_v3 = vmov (!%p165_p2), 0.0|0.0   ;;  %vm626_vm0 = vcmask (!%p165_p2), 1045504  }
   0x6   : > { %168 = sbr.rel (%p165_p2) target bundleno = 481 (0x1e1), region = 36  ;;  %1980 = vmatprep.subr.bf16.mxu0 (!%p165_p2), %v2086_v3  ;;  %2036 = vmatprep.subr.bf16.mxu1 (!%p165_p2), %v2086_v3  ;;  %v1981_v4 = vpack.c.bf16 (!%p165_p2), %v397_v1, %v396_v0  ;;  %v399_v5 = vld [vmem:[%s2937_s1 + $0x18] sm:$0xff] (!%p165_p2)  ;;  %p192_p3 = scmp.lt.s32.totalorder (!%p165_p2), %s1732_s23, 1023  ;;  %v400_v7 = vld [vmem:[%s2937_s1 + $0x20] sm:$0xff] (!%p165_p2)  ;;  %v401_v8 = vld [vmem:[%s2937_s1 + $0x28] sm:$0xff] (!%p165_p2)  ;;  %vm433_vm1 = vcmask (!%p165_p2), 310272  }
   0x7   : > { %v1984_v6 = vpack.c.bf16 (!%p165_p2), %v399_v5, %v398_v2  ;;  %v1987_v9 = vpack.c.bf16 (!%p165_p2), %v401_v8, %v400_v7  ;;  %v402_v10 = vld [vmem:[%s2937_s1 + $0x30] sm:$0xff] (!%p165_p2)  ;;  %v403_v11 = vld [vmem:[%s2937_s1 + $0x38] sm:$0xff] (!%p165_p2)  ;;  %v404_v15 = vld [vmem:[%s2937_s1 + $0x40] sm:$0xff] (!%p165_p2)  ;;  %vm1606_vm2 = vcmask (!%p165_p2), 195584  }
   0x8   : > { %1982 = vmatpush1.bf16.msra.mxu0 (!%p165_p2), %v1981_v4  ;;  %2052 = vmatpush1.bf16.msra.mxu1 (!%p165_p2), %v1981_v4  ;;  %v1990_v13 = vpack.c.bf16 (!%p165_p2), %v403_v11, %v402_v10  ;;  %v405_v16 = vld [vmem:[%s2937_s1 + $0x48] sm:$0xff] (!%p165_p2)  ;;  %v406_v18 = vld [vmem:[%s2937_s1 + $0x50] sm:$0xff] (!%p165_p2)  ;;  %v407_v19 = vld [vmem:[%s2937_s1 + $0x58] sm:$0xff] (!%p165_p2) }
   0x9   : > { %1983 = vmatprep.subr.bf16.mxu0 (!%p165_p2), %v2086_v3  ;;  %2037 = vmatprep.subr.bf16.mxu1 (!%p165_p2), %v2086_v3  ;;  %v1993_v17 = vpack.c.bf16 (!%p165_p2), %v405_v16, %v404_v15  ;;  %v1996_v20 = vpack.c.bf16 (!%p165_p2), %v407_v19, %v406_v18  ;;  %v408_v21 = vld [vmem:[%s2937_s1 + $0x60] sm:$0xff] (!%p165_p2)  ;;  %v409_v22 = vld [vmem:[%s2937_s1 + $0x68] sm:$0xff] (!%p165_p2)  ;;  %v410_v24 = vld [vmem:[%s2937_s1 + $0x70] sm:$0xff] (!%p165_p2) }
   0xa   : > { %v1999_v23 = vpack.c.bf16 (!%p165_p2), %v409_v22, %v408_v21  ;;  %v411_v25 = vld [vmem:[%s2937_s1 + $0x78] sm:$0xff] (!%p165_p2)  ;;  %v412_v27 = vld [vmem:[%s2937_s1 + $0x80] sm:$0xff] (!%p165_p2)  ;;  %v413_v28 = vld [vmem:[%s2937_s1 + $0x88] sm:$0xff] (!%p165_p2) }
   0xb   : > { %v2002_v26 = vpack.c.bf16 (!%p165_p2), %v411_v25, %v410_v24  ;;  %v2005_v29 = vpack.c.bf16 (!%p165_p2), %v413_v28, %v412_v27  ;;  %v414_v30 = vld [vmem:[%s2937_s1 + $0x90] sm:$0xff] (!%p165_p2)  ;;  %v415_v31 = vld [vmem:[%s2937_s1 + $0x98] sm:$0xff] (!%p165_p2)  ;;  %v416_v33 = vld [vmem:[%s2937_s1 + $0xa0] sm:$0xff] (!%p165_p2) }
   0xc   : > { %1985 = vmatpush1.bf16.msra.mxu0 (!%p165_p2), %v1984_v6  ;;  %2053 = vmatpush1.bf16.msra.mxu1 (!%p165_p2), %v1984_v6  ;;  %v2008_v32 = vpack.c.bf16 (!%p165_p2), %v415_v31, %v414_v30  ;;  %v417_v34 = vld [vmem:[%s2937_s1 + $0xa8] sm:$0xff] (!%p165_p2)  ;;  %v418_v36 = vld [vmem:[%s2937_s1 + $0xb0] sm:$0xff] (!%p165_p2)  ;;  %v419_v37 = vld [vmem:[%s2937_s1 + $0xb8] sm:$0xff] (!%p165_p2) }
   0xd   : > { %s2942_s23 = smov (!%p192_p3, %s1732_s23), 1023  ;;  %1986 = vmatprep.subr.bf16.mxu0 %v2086_v3  ;;  %2038 = vmatprep.subr.bf16.mxu1 %v2086_v3  ;;  %v2011_v35 = vpack.c.bf16 %v417_v34, %v416_v33  ;;  %v2014_v38 = vpack.c.bf16 %v419_v37, %v418_v36  ;;  %v420_v39 = vld [vmem:[%s2937_s1 + $0xc0] sm:$0xff]  ;;  %v421_v40 = vld [vmem:[%s2937_s1 + $0xc8] sm:$0xff]  ;;  %v422_v42 = vld [vmem:[%s2937_s1 + $0xd0] sm:$0xff] }
   0xe   : > { %s2068_s30 = smul.u32 24, %s2942_s23  ;;  %v2017_v41 = vpack.c.bf16 %v421_v40, %v420_v39  ;;  %v423_v43 = vld [vmem:[%s2937_s1 + $0xd8] sm:$0xff]  ;;  %v424_v45 = vld [vmem:[%s2937_s1 + $0xe0] sm:$0xff]  ;;  %v425_v46 = vld [vmem:[%s2937_s1 + $0xe8] sm:$0xff]  ;;  %s1735_s29 = sshll.u32 %s2942_s23, 3 }
   0xf   : > { %v2020_v44 = vpack.c.bf16 %v423_v43, %v422_v42  ;;  %v2023_v47 = vpack.c.bf16 %v425_v46, %v424_v45  ;;  %v426_v48 = vld [vmem:[%s2937_s1 + $0xf0] sm:$0xff]  ;;  %v427_v49 = vld [vmem:[%s2937_s1 + $0xf8] sm:$0xff]  ;;  %v428_v50 = vld [vmem:[%s2937_s1 + $0x100] sm:$0xff]  ;;  %s2614_s6 = scalar_lea.vmem %s2940_s4, %s1735_s29 }
  0x10   : > { %s2148_s7 = scalar_lea.vmem %s2936_s0, %s2068_s30  ;;  %1988 = vmatpush1.bf16.msra.mxu0 %v1987_v9  ;;  %2054 = vmatpush1.bf16.msra.mxu1 %v1987_v9  ;;  %v429_v51 = vld [vmem:[%s2937_s1 + $0x108] sm:$0xff]  ;;  %v2026_v52 = vpack.c.bf16 %v427_v49, %v426_v48  ;;  %v430_v54 = vld [vmem:[%s2937_s1 + $0x110] sm:$0xff]  ;;  %v431_v55 = vld [vmem:[%s2937_s1 + $0x118] sm:$0xff] }
  0x11   : > { %v205_v12 = vld [vmem:[%s2148_s7 + $0x8] sm:$0xff]  ;;  %1989 = vmatprep.subr.bf16.mxu0 %v2086_v3  ;;  %2039 = vmatprep.subr.bf16.mxu1 %v2086_v3  ;;  %v2028_v53 = vpack.c.bf16 %v429_v51, %v428_v50  ;;  %v204_v56 = vld [vmem:[%s2148_s7] sm:$0xff]  ;;  %v2032_v59 = vpack.c.bf16 %v431_v55, %v430_v54  ;;  %v207_v61 = vld [vmem:[%s2148_s7 + $0x18] sm:$0xff] }
  0x12   : > { %v349_v14 = vld [vmem:[%s2148_s7 + $0x488] sm:$0xff]  ;;  %694 = vmatprep.mubr.f32.mxu0 %v205_v12  ;;  %v348_v57 = vld [vmem:[%s2148_s7 + $0x480] sm:$0xff]  ;;  %v351_v62 = vld [vmem:[%s2148_s7 + $0x498] sm:$0xff] }
  0x13   : > { %934 = vmatprep.mubr.f32.mxu1 %v349_v14  ;;  %v208_v58 = vld [vmem:[%s2148_s7 + $0x20] sm:$0xff]  ;;  %v211_v63 = vld [vmem:[%s2148_s7 + $0x38] sm:$0xff]  ;;  %v210_v2 = vld [vmem:[%s2148_s7 + $0x30] sm:$0xff] }
  0x14   : > { %1991 = vmatpush1.bf16.msra.mxu0 %v1990_v13  ;;  %2055 = vmatpush1.bf16.msra.mxu1 %v1990_v13  ;;  %v352_v60 = vld [vmem:[%s2148_s7 + $0x4a0] sm:$0xff]  ;;  %v355_v0 = vld [vmem:[%s2148_s7 + $0x4b8] sm:$0xff]  ;;  %v214_v4 = vld [vmem:[%s2148_s7 + $0x50] sm:$0xff] }
  0x15   : > { %1992 = vmatprep.subr.bf16.mxu0 %v2086_v3  ;;  %2040 = vmatprep.subr.bf16.mxu1 %v2086_v3  ;;  %v432_v1 = vld [vmem:[%s2937_s1 + $0x120] sm:$0x3f]  ;;  %v358_v5 = vld [vmem:[%s2148_s7 + $0x4d0] sm:$0xff]  ;;  %v213_v6 = vld [vmem:[%s2148_s7 + $0x48] sm:$0xff] }
  0x16   : > { %v357_v7 = vld [vmem:[%s2148_s7 + $0x4c8] sm:$0xff]  ;;  %v216_v10 = vld [vmem:[%s2148_s7 + $0x60] sm:$0xff]  ;;  %v219_v14 = vld [vmem:[%s2148_s7 + $0x78] sm:$0xff] }
  0x17   : > { %v217_v8 = vld [vmem:[%s2148_s7 + $0x68] sm:$0xff]  ;;  %v360_v11 = vld [vmem:[%s2148_s7 + $0x4e0] sm:$0xff]  ;;  %v363_v15 = vld [vmem:[%s2148_s7 + $0x4f8] sm:$0xff] }
  0x18   : > { %1994 = vmatpush1.bf16.msra.mxu0 %v1993_v17  ;;  %2056 = vmatpush1.bf16.msra.mxu1 %v1993_v17  ;;  %v361_v9 = vld [vmem:[%s2148_s7 + $0x4e8] sm:$0xff]  ;;  %v220_v12 = vld [vmem:[%s2148_s7 + $0x80] sm:$0xff]  ;;  %v223_v16 = vld [vmem:[%s2148_s7 + $0x98] sm:$0xff] }
  0x19   : > { %1995 = vmatprep.subr.bf16.mxu0 %v2086_v3  ;;  %2041 = vmatprep.subr.bf16.mxu1 %v2086_v3  ;;  %v364_v13 = vld [vmem:[%s2148_s7 + $0x500] sm:$0xff]  ;;  %v367_v17 = vld [vmem:[%s2148_s7 + $0x518] sm:$0xff]  ;;  %v222_v18 = vld [vmem:[%s2148_s7 + $0x90] sm:$0xff] }
  0x1a   : > { %v366_v19 = vld [vmem:[%s2148_s7 + $0x510] sm:$0xff]  ;;  %v225_v22 = vld [vmem:[%s2148_s7 + $0xa8] sm:$0xff]  ;;  %v372_v27 = vld [vmem:[%s2148_s7 + $0x540] sm:$0xff] }
  0x1b   : > { %v370_v21 = vld [vmem:[%s2148_s7 + $0x530] sm:$0xff]  ;;  %v229_v24 = vld [vmem:[%s2148_s7 + $0xc8] sm:$0xff]  ;;  %v232_v28 = vld [vmem:[%s2148_s7 + $0xe0] sm:$0xff] }
  0x1c   : > { %1997 = vmatpush1.bf16.msra.mxu0 %v1996_v20  ;;  %2057 = vmatpush1.bf16.msra.mxu1 %v1996_v20  ;;  %v226_v20 = vld [vmem:[%s2148_s7 + $0xb0] sm:$0xff]  ;;  %v373_v25 = vld [vmem:[%s2148_s7 + $0x548] sm:$0xff]  ;;  %v231_v30 = vld [vmem:[%s2148_s7 + $0xd8] sm:$0xff] }
  0x1d   : > { %1998 = vmatprep.subr.bf16.mxu0 %v2086_v3  ;;  %2042 = vmatprep.subr.bf16.mxu1 %v2086_v3  ;;  %v375_v31 = vld [vmem:[%s2148_s7 + $0x558] sm:$0xff]  ;;  %v234_v34 = vld [vmem:[%s2148_s7 + $0xf0] sm:$0xff]  ;;  %v381_v39 = vld [vmem:[%s2148_s7 + $0x588] sm:$0xff] }
  0x1e   : > { %v379_v33 = vld [vmem:[%s2148_s7 + $0x578] sm:$0xff]  ;;  %v238_v36 = vld [vmem:[%s2148_s7 + $0x110] sm:$0xff]  ;;  %v241_v40 = vld [vmem:[%s2148_s7 + $0x128] sm:$0xff] }
  0x1f   : > { %v382_v37 = vld [vmem:[%s2148_s7 + $0x590] sm:$0xff]  ;;  %v240_v42 = vld [vmem:[%s2148_s7 + $0x120] sm:$0xff]  ;;  %v243_v46 = vld [vmem:[%s2148_s7 + $0x138] sm:$0xff] }
  0x20   : > { %2000 = vmatpush1.bf16.msra.mxu0 %v1999_v23  ;;  %2058 = vmatpush1.bf16.msra.mxu1 %v1999_v23  ;;  %v369_v23 = vld [vmem:[%s2148_s7 + $0x528] sm:$0xff]  ;;  %v384_v43 = vld [vmem:[%s2148_s7 + $0x5a0] sm:$0xff]  ;;  %v247_v48 = vld [vmem:[%s2148_s7 + $0x158] sm:$0xff] }
  0x21   : > { %2001 = vmatprep.subr.bf16.mxu0 %v2086_v3  ;;  %2043 = vmatprep.subr.bf16.mxu1 %v2086_v3  ;;  %v388_v45 = vld [vmem:[%s2148_s7 + $0x5c0] sm:$0xff]  ;;  %v391_v49 = vld [vmem:[%s2148_s7 + $0x5d8] sm:$0xff]  ;;  %v246_v50 = vld [vmem:[%s2148_s7 + $0x150] sm:$0xff] }
  0x22   : > { %v390_v51 = vld [vmem:[%s2148_s7 + $0x5d0] sm:$0xff]  ;;  %v249_v54 = vld [vmem:[%s2148_s7 + $0x168] sm:$0xff] }
  0x23   : > { %v393_v55 = vld [vmem:[%s2148_s7 + $0x5e8] sm:$0xff] }
  0x24   : > { %2003 = vmatpush1.bf16.msra.mxu0 %v2002_v26  ;;  %2059 = vmatpush1.bf16.msra.mxu1 %v2002_v26  ;;  %v228_v26 = vld [vmem:[%s2148_s7 + $0xc0] sm:$0xff] }
  0x25   : > { %2004 = vmatprep.subr.bf16.mxu0 %v2086_v3  ;;  %2044 = vmatprep.subr.bf16.mxu1 %v2086_v3 }
  0x28   : > { %2006 = vmatpush1.bf16.msra.mxu0 %v2005_v29  ;;  %2060 = vmatpush1.bf16.msra.mxu1 %v2005_v29  ;;  %v376_v29 = vld [vmem:[%s2148_s7 + $0x560] sm:$0xff] }
  0x29   : > { %2007 = vmatprep.subr.bf16.mxu0 %v2086_v3  ;;  %2045 = vmatprep.subr.bf16.mxu1 %v2086_v3 }
  0x2c   : > { %2009 = vmatpush1.bf16.msra.mxu0 %v2008_v32  ;;  %2061 = vmatpush1.bf16.msra.mxu1 %v2008_v32  ;;  %v235_v32 = vld [vmem:[%s2148_s7 + $0xf8] sm:$0xff] }
  0x2d   : > { %2010 = vmatprep.subr.bf16.mxu0 %v2086_v3  ;;  %2046 = vmatprep.subr.bf16.mxu1 %v2086_v3 }
  0x30   : > { %2012 = vmatpush1.bf16.msra.mxu0 %v2011_v35  ;;  %2062 = vmatpush1.bf16.msra.mxu1 %v2011_v35  ;;  %v378_v35 = vld [vmem:[%s2148_s7 + $0x570] sm:$0xff] }
  0x31   : > { %2013 = vmatprep.subr.bf16.mxu0 %v2086_v3  ;;  %2047 = vmatprep.subr.bf16.mxu1 %v2086_v3 }
  0x34   : > { %2015 = vmatpush1.bf16.msra.mxu0 %v2014_v38  ;;  %2063 = vmatpush1.bf16.msra.mxu1 %v2014_v38  ;;  %v237_v38 = vld [vmem:[%s2148_s7 + $0x108] sm:$0xff] }
  0x35   : > { %2016 = vmatprep.subr.bf16.mxu0 %v2086_v3  ;;  %2048 = vmatprep.subr.bf16.mxu1 %v2086_v3 }
  0x38   : > { %2018 = vmatpush1.bf16.msra.mxu0 %v2017_v41  ;;  %2064 = vmatpush1.bf16.msra.mxu1 %v2017_v41  ;;  %v385_v41 = vld [vmem:[%s2148_s7 + $0x5a8] sm:$0xff] }
  0x39   : > { %2019 = vmatprep.subr.bf16.mxu0 %v2086_v3  ;;  %2049 = vmatprep.subr.bf16.mxu1 %v2086_v3 }
  0x3c   : > { %2021 = vmatpush1.bf16.msra.mxu0 %v2020_v44  ;;  %2065 = vmatpush1.bf16.msra.mxu1 %v2020_v44  ;;  %v244_v44 = vld [vmem:[%s2148_s7 + $0x140] sm:$0xff] }
  0x3d   : > { %2022 = vmatprep.subr.bf16.mxu0 %v2086_v3  ;;  %2050 = vmatprep.subr.bf16.mxu1 %v2086_v3 }
  0x40   : > { %2024 = vmatpush1.bf16.msra.mxu0 %v2023_v47  ;;  %2066 = vmatpush1.bf16.msra.mxu1 %v2023_v47  ;;  %v387_v47 = vld [vmem:[%s2148_s7 + $0x5b8] sm:$0xff] }
  0x41   : > { %2025 = vmatprep.subr.bf16.mxu0 %v2086_v3  ;;  %2051 = vmatprep.subr.bf16.mxu1 %v2086_v3  ;;  %v354_v3 = vld [vmem:[%s2148_s7 + $0x4b0] sm:$0xff] }
  0x44   : > { %2027 = vmatpush1.bf16.msra.mxu0 %v2026_v52  ;;  %2067 = vmatpush1.bf16.msra.mxu1 %v2026_v52  ;;  %v250_v52 = vld [vmem:[%s2148_s7 + $0x170] sm:$0xff] }
  0x45   : > { %2029 = vmatprep.subr.bf16.mxu1 %v2028_v53 }
  0x47   : > { %695 = vmatmul.mubr.f32.vlgmr.msra.gmra.mrb[0].mxu0 %v204_v56  ;;  %935 = vmatmul.mubr.f32.vlgmr.msra.gmra.mrb[0].mxu1 %v348_v57  ;;  %v253_v56 = vld [vmem:[%s2148_s7 + $0x188] sm:$0xff]  ;;  %v206_v57 = vld [vmem:[%s2148_s7 + $0x10] sm:$0xff] }
  0x48   : > { %2031 = vmatpush3.bf16.msra.mxu1 %v2028_v53  ;;  %699 = vmatprep.mubr.f32.mxu0 %v208_v58  ;;  %v394_v53 = vld [vmem:[%s2148_s7 + $0x5f0] sm:$0xff]  ;;  %v252_v58 = vld [vmem:[%s2148_s7 + $0x180] sm:$0xff] }
  0x49   : > { %939 = vmatprep.mubr.f32.mxu1 %v352_v60  ;;  %2033 = vmatprep.subr.bf16.mxu1 %v2032_v59  ;;  %v256_v60 = vld [vmem:[%s2148_s7 + $0x1a0] sm:$0xff] }
  0x4b   : > { %700 = vmatmul.mubr.f32.gmra.mrb[2].mxu0 %v207_v61  ;;  %940 = vmatmul.mubr.f32.gmra.mrb[2].mxu1 %v351_v62  ;;  %v212_v61 = vld [vmem:[%s2148_s7 + $0x40] sm:$0xff]  ;;  %v255_v62 = vld [vmem:[%s2148_s7 + $0x198] sm:$0xff] }
  0x4c   : > { %704 = vmatprep.mubr.f32.mxu0 %v211_v63  ;;  %944 = vmatprep.mubr.f32.mxu1 %v355_v0  ;;  %v215_v63 = vld [vmem:[%s2148_s7 + $0x58] sm:$0xff] }
  0x4d   : > { %2035 = vmatpush3.bf16.msra.mxu1 %v2032_v59  ;;  %v209_v59 = vld [vmem:[%s2148_s7 + $0x28] sm:$0xff]  ;;  %v259_v0 = vld [vmem:[%s2148_s7 + $0x1b8] sm:$0xff] }
  0x4e   : > { %1882 = vmatprep.subr.msk.mxu1 %vm626_vm0, %v432_v1 }
  0x4f   : > { %705 = vmatmul.mubr.f32.gmra.mrb[4].mxu0 %v210_v2  ;;  %945 = vmatmul.mubr.f32.gmra.mrb[4].mxu1 %v354_v3  ;;  %v258_v2 = vld [vmem:[%s2148_s7 + $0x1b0] sm:$0xff]  ;;  %v221_v3 = vld [vmem:[%s2148_s7 + $0x88] sm:$0xff] }
  0x50   : > { %709 = vmatprep.mubr.f32.mxu0 %v214_v4  ;;  %949 = vmatprep.mubr.f32.mxu1 %v358_v5  ;;  %v262_v4 = vld [vmem:[%s2148_s7 + $0x1d0] sm:$0xff]  ;;  %v224_v5 = vld [vmem:[%s2148_s7 + $0xa0] sm:$0xff] }
  0x51   : > { %1883 = vmatpush3.msk.msra.mxu1 %vm626_vm0, %v432_v1  ;;  %v218_v1 = vld [vmem:[%s2148_s7 + $0x70] sm:$0xff] }
  0x53   : > { %710 = vmatmul.mubr.f32.gmra.mrb[6].mxu0 %v213_v6  ;;  %950 = vmatmul.mubr.f32.gmra.mrb[6].mxu1 %v357_v7  ;;  %v261_v6 = vld [vmem:[%s2148_s7 + $0x1c8] sm:$0xff]  ;;  %v227_v7 = vld [vmem:[%s2148_s7 + $0xb8] sm:$0xff] }
  0x54   : > { %714 = vmatprep.mubr.f32.mxu0 %v217_v8  ;;  %954 = vmatprep.mubr.f32.mxu1 %v361_v9  ;;  %v265_v8 = vld [vmem:[%s2148_s7 + $0x1e8] sm:$0xff]  ;;  %v230_v9 = vld [vmem:[%s2148_s7 + $0xd0] sm:$0xff] }
  0x57   : > { %715 = vmatmul.mubr.f32.gmra.mrb[8].mxu0 %v216_v10  ;;  %955 = vmatmul.mubr.f32.gmra.mrb[8].mxu1 %v360_v11  ;;  %v264_v10 = vld [vmem:[%s2148_s7 + $0x1e0] sm:$0xff]  ;;  %v233_v11 = vld [vmem:[%s2148_s7 + $0xe8] sm:$0xff] }
  0x58   : > { %719 = vmatprep.mubr.f32.mxu0 %v220_v12  ;;  %959 = vmatprep.mubr.f32.mxu1 %v364_v13  ;;  %v268_v12 = vld [vmem:[%s2148_s7 + $0x200] sm:$0xff] }
  0x59   : > { %v236_v13 = vld [vmem:[%s2148_s7 + $0x100] sm:$0xff] }
  0x5b   : > { %720 = vmatmul.mubr.f32.gmra.mrb[10].mxu0 %v219_v14  ;;  %960 = vmatmul.mubr.f32.gmra.mrb[10].mxu1 %v363_v15  ;;  %v267_v14 = vld [vmem:[%s2148_s7 + $0x1f8] sm:$0xff] }
  0x5c   : > { %724 = vmatprep.mubr.f32.mxu0 %v223_v16  ;;  %964 = vmatprep.mubr.f32.mxu1 %v367_v17  ;;  %v239_v15 = vld [vmem:[%s2148_s7 + $0x118] sm:$0xff]  ;;  %v242_v17 = vld [vmem:[%s2148_s7 + $0x130] sm:$0xff] }
  0x5d   : > { %v271_v16 = vld [vmem:[%s2148_s7 + $0x218] sm:$0xff] }
  0x5f   : > { %725 = vmatmul.mubr.f32.gmra.mrb[12].mxu0 %v222_v18  ;;  %965 = vmatmul.mubr.f32.gmra.mrb[12].mxu1 %v366_v19  ;;  %v270_v18 = vld [vmem:[%s2148_s7 + $0x210] sm:$0xff]  ;;  %v245_v19 = vld [vmem:[%s2148_s7 + $0x148] sm:$0xff] }
  0x60   : > { %729 = vmatprep.mubr.f32.mxu0 %v226_v20  ;;  %969 = vmatprep.mubr.f32.mxu1 %v370_v21  ;;  %v274_v20 = vld [vmem:[%s2148_s7 + $0x230] sm:$0xff]  ;;  %v248_v21 = vld [vmem:[%s2148_s7 + $0x160] sm:$0xff] }
  0x63   : > { %730 = vmatmul.mubr.f32.gmra.mrb[14].mxu0 %v225_v22  ;;  %970 = vmatmul.mubr.f32.gmra.mrb[14].mxu1 %v369_v23  ;;  %v273_v22 = vld [vmem:[%s2148_s7 + $0x228] sm:$0xff]  ;;  %v251_v23 = vld [vmem:[%s2148_s7 + $0x178] sm:$0xff] }
  0x64   : > { %734 = vmatprep.mubr.f32.mxu0 %v229_v24  ;;  %974 = vmatprep.mubr.f32.mxu1 %v373_v25  ;;  %v277_v24 = vld [vmem:[%s2148_s7 + $0x248] sm:$0xff]  ;;  %v254_v25 = vld [vmem:[%s2148_s7 + $0x190] sm:$0xff] }
  0x67   : > { %735 = vmatmul.mubr.f32.gmra.mrb[16].mxu0 %v228_v26  ;;  %975 = vmatmul.mubr.f32.gmra.mrb[16].mxu1 %v372_v27  ;;  %v276_v26 = vld [vmem:[%s2148_s7 + $0x240] sm:$0xff]  ;;  %v257_v27 = vld [vmem:[%s2148_s7 + $0x1a8] sm:$0xff] }
  0x68   : > { %739 = vmatprep.mubr.f32.mxu0 %v232_v28  ;;  %979 = vmatprep.mubr.f32.mxu1 %v376_v29  ;;  %v280_v28 = vld [vmem:[%s2148_s7 + $0x260] sm:$0xff] }
  0x69   : > { %v260_v29 = vld [vmem:[%s2148_s7 + $0x1c0] sm:$0xff] }
  0x6b   : > { %740 = vmatmul.mubr.f32.gmra.mrb[18].mxu0 %v231_v30  ;;  %980 = vmatmul.mubr.f32.gmra.mrb[18].mxu1 %v375_v31  ;;  %v279_v30 = vld [vmem:[%s2148_s7 + $0x258] sm:$0xff] }
  0x6c   : > { %744 = vmatprep.mubr.f32.mxu0 %v235_v32  ;;  %984 = vmatprep.mubr.f32.mxu1 %v379_v33  ;;  %v263_v31 = vld [vmem:[%s2148_s7 + $0x1d8] sm:$0xff]  ;;  %v266_v33 = vld [vmem:[%s2148_s7 + $0x1f0] sm:$0xff] }
  0x6d   : > { %v283_v32 = vld [vmem:[%s2148_s7 + $0x278] sm:$0xff] }
  0x6f   : > { %745 = vmatmul.mubr.f32.gmra.mrb[20].mxu0 %v234_v34  ;;  %985 = vmatmul.mubr.f32.gmra.mrb[20].mxu1 %v378_v35  ;;  %v282_v34 = vld [vmem:[%s2148_s7 + $0x270] sm:$0xff]  ;;  %v269_v35 = vld [vmem:[%s2148_s7 + $0x208] sm:$0xff] }
  0x70   : > { %749 = vmatprep.mubr.f32.mxu0 %v238_v36  ;;  %989 = vmatprep.mubr.f32.mxu1 %v382_v37  ;;  %v286_v36 = vld [vmem:[%s2148_s7 + $0x290] sm:$0xff]  ;;  %v272_v37 = vld [vmem:[%s2148_s7 + $0x220] sm:$0xff] }
  0x73   : > { %750 = vmatmul.mubr.f32.gmra.mrb[22].mxu0 %v237_v38  ;;  %990 = vmatmul.mubr.f32.gmra.mrb[22].mxu1 %v381_v39  ;;  %v285_v38 = vld [vmem:[%s2148_s7 + $0x288] sm:$0xff]  ;;  %v275_v39 = vld [vmem:[%s2148_s7 + $0x238] sm:$0xff] }
  0x74   : > { %754 = vmatprep.mubr.f32.mxu0 %v241_v40  ;;  %994 = vmatprep.mubr.f32.mxu1 %v385_v41  ;;  %v289_v40 = vld [vmem:[%s2148_s7 + $0x2a8] sm:$0xff]  ;;  %v278_v41 = vld [vmem:[%s2148_s7 + $0x250] sm:$0xff] }
  0x77   : > { %755 = vmatmul.mubr.f32.gmra.mrb[24].mxu0 %v240_v42  ;;  %995 = vmatmul.mubr.f32.gmra.mrb[24].mxu1 %v384_v43  ;;  %v288_v42 = vld [vmem:[%s2148_s7 + $0x2a0] sm:$0xff]  ;;  %v281_v43 = vld [vmem:[%s2148_s7 + $0x268] sm:$0xff] }
  0x78   : > { %759 = vmatprep.mubr.f32.mxu0 %v244_v44  ;;  %999 = vmatprep.mubr.f32.mxu1 %v388_v45  ;;  %v292_v44 = vld [vmem:[%s2148_s7 + $0x2c0] sm:$0xff] }
  0x79   : > { %v284_v45 = vld [vmem:[%s2148_s7 + $0x280] sm:$0xff] }
  0x7b   : > { %760 = vmatmul.mubr.f32.gmra.mrb[26].mxu0 %v243_v46  ;;  %1000 = vmatmul.mubr.f32.gmra.mrb[26].mxu1 %v387_v47  ;;  %v291_v46 = vld [vmem:[%s2148_s7 + $0x2b8] sm:$0xff] }
  0x7c   : > { %764 = vmatprep.mubr.f32.mxu0 %v247_v48  ;;  %1004 = vmatprep.mubr.f32.mxu1 %v391_v49  ;;  %v287_v47 = vld [vmem:[%s2148_s7 + $0x298] sm:$0xff]  ;;  %v290_v49 = vld [vmem:[%s2148_s7 + $0x2b0] sm:$0xff] }
  0x7d   : > { %v295_v48 = vld [vmem:[%s2148_s7 + $0x2d8] sm:$0xff] }
  0x7f   : > { %765 = vmatmul.mubr.f32.gmra.mrb[28].mxu0 %v246_v50  ;;  %1005 = vmatmul.mubr.f32.gmra.mrb[28].mxu1 %v390_v51  ;;  %v294_v50 = vld [vmem:[%s2148_s7 + $0x2d0] sm:$0xff]  ;;  %v293_v51 = vld [vmem:[%s2148_s7 + $0x2c8] sm:$0xff] }
  0x80   : > { %769 = vmatprep.mubr.f32.mxu0 %v250_v52  ;;  %1009 = vmatprep.mubr.f32.mxu1 %v394_v53  ;;  %v298_v52 = vld [vmem:[%s2148_s7 + $0x2f0] sm:$0xff]  ;;  %v296_v53 = vld [vmem:[%s2148_s7 + $0x2e0] sm:$0xff] }
  0x83   : > { %770 = vmatmul.mubr.f32.gmra.mrb[30].mxu0 %v249_v54  ;;  %1010 = vmatmul.mubr.f32.gmra.mrb[30].mxu1 %v393_v55  ;;  %v297_v54 = vld [vmem:[%s2148_s7 + $0x2e8] sm:$0xff]  ;;  %v299_v55 = vld [vmem:[%s2148_s7 + $0x2f8] sm:$0xff] }
  0x84   : > { %774 = vmatprep.mubr.f32.mxu0 %v253_v56  ;;  %1884 = vmatprep.mubr.msk.f32.mxu1 %vm433_vm1, %v206_v57  ;;  %v301_v56 = vld [vmem:[%s2148_s7 + $0x308] sm:$0xff]  ;;  %v302_v57 = vld [vmem:[%s2148_s7 + $0x310] sm:$0xff] }
  0x87   : > { %775 = vmatmul.mubr.f32.gmra.mrb[32].mxu0 %v252_v58  ;;  %1885 = vmatmul.mubr.msk.f32.vlgmr.msra.gmra.mrb[32].mxu1 %vm433_vm1, %v209_v59  ;;  %v300_v58 = vld [vmem:[%s2148_s7 + $0x300] sm:$0xff]  ;;  %v305_v59 = vld [vmem:[%s2148_s7 + $0x328] sm:$0xff] }
  0x88   : > { %779 = vmatprep.mubr.f32.mxu0 %v256_v60  ;;  %1887 = vmatprep.mubr.msk.f32.mxu1 %vm433_vm1, %v212_v61  ;;  %v304_v60 = vld [vmem:[%s2148_s7 + $0x320] sm:$0xff] }
  0x89   : > { %v308_v61 = vld [vmem:[%s2148_s7 + $0x340] sm:$0xff] }
  0x8b   : > { %780 = vmatmul.mubr.f32.gmra.mrb[34].mxu0 %v255_v62  ;;  %1888 = vmatmul.mubr.msk.f32.gmra.mrb[34].mxu1 %vm433_vm1, %v215_v63  ;;  %v303_v62 = vld [vmem:[%s2148_s7 + $0x318] sm:$0xff] }
  0x8c   : > { %784 = vmatprep.mubr.f32.mxu0 %v259_v0  ;;  %1890 = vmatprep.mubr.msk.f32.mxu1 %vm433_vm1, %v218_v1  ;;  %v311_v63 = vld [vmem:[%s2148_s7 + $0x358] sm:$0xff]  ;;  %v314_v1 = vld [vmem:[%s2148_s7 + $0x370] sm:$0xff] }
  0x8d   : > { %v307_v0 = vld [vmem:[%s2148_s7 + $0x338] sm:$0xff] }
  0x8f   : > { %785 = vmatmul.mubr.f32.gmra.mrb[36].mxu0 %v258_v2  ;;  %1891 = vmatmul.mubr.msk.f32.gmra.mrb[36].mxu1 %vm433_vm1, %v221_v3  ;;  %v306_v2 = vld [vmem:[%s2148_s7 + $0x330] sm:$0xff]  ;;  %v317_v3 = vld [vmem:[%s2148_s7 + $0x388] sm:$0xff] }
  0x90   : > { %789 = vmatprep.mubr.f32.mxu0 %v262_v4  ;;  %1893 = vmatprep.mubr.msk.f32.mxu1 %vm433_vm1, %v224_v5  ;;  %v310_v4 = vld [vmem:[%s2148_s7 + $0x350] sm:$0xff]  ;;  %v320_v5 = vld [vmem:[%s2148_s7 + $0x3a0] sm:$0xff] }
  0x93   : > { %790 = vmatmul.mubr.f32.gmra.mrb[38].mxu0 %v261_v6  ;;  %1894 = vmatmul.mubr.msk.f32.gmra.mrb[38].mxu1 %vm433_vm1, %v227_v7  ;;  %v309_v6 = vld [vmem:[%s2148_s7 + $0x348] sm:$0xff]  ;;  %v323_v7 = vld [vmem:[%s2148_s7 + $0x3b8] sm:$0xff] }
  0x94   : > { %794 = vmatprep.mubr.f32.mxu0 %v265_v8  ;;  %1896 = vmatprep.mubr.msk.f32.mxu1 %vm433_vm1, %v230_v9  ;;  %v313_v8 = vld [vmem:[%s2148_s7 + $0x368] sm:$0xff]  ;;  %v326_v9 = vld [vmem:[%s2148_s7 + $0x3d0] sm:$0xff] }
  0x97   : > { %795 = vmatmul.mubr.f32.gmra.mrb[40].mxu0 %v264_v10  ;;  %1897 = vmatmul.mubr.msk.f32.gmra.mrb[40].mxu1 %vm433_vm1, %v233_v11  ;;  %v312_v10 = vld [vmem:[%s2148_s7 + $0x360] sm:$0xff]  ;;  %v329_v11 = vld [vmem:[%s2148_s7 + $0x3e8] sm:$0xff] }
  0x98   : > { %799 = vmatprep.mubr.f32.mxu0 %v268_v12  ;;  %1899 = vmatprep.mubr.msk.f32.mxu1 %vm433_vm1, %v236_v13  ;;  %v316_v12 = vld [vmem:[%s2148_s7 + $0x380] sm:$0xff] }
  0x99   : > { %v332_v13 = vld [vmem:[%s2148_s7 + $0x400] sm:$0xff] }
  0x9b   : > { %800 = vmatmul.mubr.f32.gmra.mrb[42].mxu0 %v267_v14  ;;  %1900 = vmatmul.mubr.msk.f32.gmra.mrb[42].mxu1 %vm433_vm1, %v239_v15  ;;  %v315_v14 = vld [vmem:[%s2148_s7 + $0x378] sm:$0xff] }
  0x9c   : > { %804 = vmatprep.mubr.f32.mxu0 %v271_v16  ;;  %1902 = vmatprep.mubr.msk.f32.mxu1 %vm433_vm1, %v242_v17  ;;  %v335_v15 = vld [vmem:[%s2148_s7 + $0x418] sm:$0xff]  ;;  %v338_v17 = vld [vmem:[%s2148_s7 + $0x430] sm:$0xff] }
  0x9d   : > { %v319_v16 = vld [vmem:[%s2148_s7 + $0x398] sm:$0xff] }
  0x9f   : > { %805 = vmatmul.mubr.f32.gmra.mrb[44].mxu0 %v270_v18  ;;  %1903 = vmatmul.mubr.msk.f32.gmra.mrb[44].mxu1 %vm433_vm1, %v245_v19  ;;  %v318_v18 = vld [vmem:[%s2148_s7 + $0x390] sm:$0xff]  ;;  %v341_v19 = vld [vmem:[%s2148_s7 + $0x448] sm:$0xff] }
  0xa0   : > { %809 = vmatprep.mubr.f32.mxu0 %v274_v20  ;;  %1905 = vmatprep.mubr.msk.f32.mxu1 %vm433_vm1, %v248_v21  ;;  %v322_v20 = vld [vmem:[%s2148_s7 + $0x3b0] sm:$0xff]  ;;  %v344_v21 = vld [vmem:[%s2148_s7 + $0x460] sm:$0xff] }
  0xa3   : > { %810 = vmatmul.mubr.f32.gmra.mrb[46].mxu0 %v273_v22  ;;  %1906 = vmatmul.mubr.msk.f32.gmra.mrb[46].mxu1 %vm433_vm1, %v251_v23  ;;  %v321_v22 = vld [vmem:[%s2148_s7 + $0x3a8] sm:$0xff]  ;;  %v347_v23 = vld [vmem:[%s2148_s7 + $0x478] sm:$0xff] }
  0xa4   : > { %814 = vmatprep.mubr.f32.mxu0 %v277_v24  ;;  %1908 = vmatprep.mubr.msk.f32.mxu1 %vm433_vm1, %v254_v25  ;;  %v325_v24 = vld [vmem:[%s2148_s7 + $0x3c8] sm:$0xff]  ;;  %v350_v25 = vld [vmem:[%s2148_s7 + $0x490] sm:$0xff] }
  0xa7   : > { %815 = vmatmul.mubr.f32.gmra.mrb[48].mxu0 %v276_v26  ;;  %1909 = vmatmul.mubr.msk.f32.gmra.mrb[48].mxu1 %vm433_vm1, %v257_v27  ;;  %v324_v26 = vld [vmem:[%s2148_s7 + $0x3c0] sm:$0xff]  ;;  %v353_v27 = vld [vmem:[%s2148_s7 + $0x4a8] sm:$0xff] }
  0xa8   : > { %819 = vmatprep.mubr.f32.mxu0 %v280_v28  ;;  %1911 = vmatprep.mubr.msk.f32.mxu1 %vm433_vm1, %v260_v29  ;;  %v328_v28 = vld [vmem:[%s2148_s7 + $0x3e0] sm:$0xff] }
  0xa9   : > { %v356_v29 = vld [vmem:[%s2148_s7 + $0x4c0] sm:$0xff] }
  0xab   : > { %820 = vmatmul.mubr.f32.gmra.mrb[50].mxu0 %v279_v30  ;;  %1912 = vmatmul.mubr.msk.f32.gmra.mrb[50].mxu1 %vm433_vm1, %v263_v31  ;;  %v327_v30 = vld [vmem:[%s2148_s7 + $0x3d8] sm:$0xff] }
  0xac   : > { %824 = vmatprep.mubr.f32.mxu0 %v283_v32  ;;  %1914 = vmatprep.mubr.msk.f32.mxu1 %vm433_vm1, %v266_v33  ;;  %v359_v31 = vld [vmem:[%s2148_s7 + $0x4d8] sm:$0xff]  ;;  %v362_v33 = vld [vmem:[%s2148_s7 + $0x4f0] sm:$0xff] }
  0xad   : > { %v331_v32 = vld [vmem:[%s2148_s7 + $0x3f8] sm:$0xff] }
  0xaf   : > { %825 = vmatmul.mubr.f32.gmra.mrb[52].mxu0 %v282_v34  ;;  %1915 = vmatmul.mubr.msk.f32.gmra.mrb[52].mxu1 %vm433_vm1, %v269_v35  ;;  %v330_v34 = vld [vmem:[%s2148_s7 + $0x3f0] sm:$0xff]  ;;  %v365_v35 = vld [vmem:[%s2148_s7 + $0x508] sm:$0xff] }
  0xb0   : > { %829 = vmatprep.mubr.f32.mxu0 %v286_v36  ;;  %1917 = vmatprep.mubr.msk.f32.mxu1 %vm433_vm1, %v272_v37  ;;  %v334_v36 = vld [vmem:[%s2148_s7 + $0x410] sm:$0xff]  ;;  %v368_v37 = vld [vmem:[%s2148_s7 + $0x520] sm:$0xff] }
  0xb3   : > { %830 = vmatmul.mubr.f32.gmra.mrb[54].mxu0 %v285_v38  ;;  %1918 = vmatmul.mubr.msk.f32.gmra.mrb[54].mxu1 %vm433_vm1, %v275_v39  ;;  %v333_v38 = vld [vmem:[%s2148_s7 + $0x408] sm:$0xff]  ;;  %v371_v39 = vld [vmem:[%s2148_s7 + $0x538] sm:$0xff] }
  0xb4   : > { %834 = vmatprep.mubr.f32.mxu0 %v289_v40  ;;  %1920 = vmatprep.mubr.msk.f32.mxu1 %vm433_vm1, %v278_v41  ;;  %v337_v40 = vld [vmem:[%s2148_s7 + $0x428] sm:$0xff]  ;;  %v374_v41 = vld [vmem:[%s2148_s7 + $0x550] sm:$0xff] }
  0xb7   : > { %835 = vmatmul.mubr.f32.gmra.mrb[56].mxu0 %v288_v42  ;;  %1921 = vmatmul.mubr.msk.f32.gmra.mrb[56].mxu1 %vm433_vm1, %v281_v43  ;;  %v336_v42 = vld [vmem:[%s2148_s7 + $0x420] sm:$0xff]  ;;  %v377_v43 = vld [vmem:[%s2148_s7 + $0x568] sm:$0xff] }
  0xb8   : > { %839 = vmatprep.mubr.f32.mxu0 %v292_v44  ;;  %1923 = vmatprep.mubr.msk.f32.mxu1 %vm433_vm1, %v284_v45  ;;  %v340_v44 = vld [vmem:[%s2148_s7 + $0x440] sm:$0xff] }
  0xb9   : > { %v380_v45 = vld [vmem:[%s2148_s7 + $0x580] sm:$0xff] }
  0xbb   : > { %840 = vmatmul.mubr.f32.gmra.mrb[58].mxu0 %v291_v46  ;;  %1924 = vmatmul.mubr.msk.f32.gmra.mrb[58].mxu1 %vm433_vm1, %v287_v47  ;;  %v339_v46 = vld [vmem:[%s2148_s7 + $0x438] sm:$0xff] }
  0xbc   : > { %844 = vmatprep.mubr.f32.mxu0 %v295_v48  ;;  %1926 = vmatprep.mubr.msk.f32.mxu1 %vm433_vm1, %v290_v49  ;;  %v383_v47 = vld [vmem:[%s2148_s7 + $0x598] sm:$0xff]  ;;  %v386_v49 = vld [vmem:[%s2148_s7 + $0x5b0] sm:$0xff] }
  0xbd   : > { %v343_v48 = vld [vmem:[%s2148_s7 + $0x458] sm:$0xff] }
  0xbf   : > { %845 = vmatmul.mubr.f32.gmra.mrb[60].mxu0 %v294_v50  ;;  %1927 = vmatmul.mubr.msk.f32.gmra.mrb[60].mxu1 %vm433_vm1, %v293_v51  ;;  %v342_v50 = vld [vmem:[%s2148_s7 + $0x450] sm:$0xff]  ;;  %v389_v51 = vld [vmem:[%s2148_s7 + $0x5c8] sm:$0xff] }
  0xc0   : > { %849 = vmatprep.mubr.f32.mxu0 %v298_v52  ;;  %1929 = vmatprep.mubr.msk.f32.mxu1 %vm433_vm1, %v296_v53  ;;  %v346_v52 = vld [vmem:[%s2148_s7 + $0x470] sm:$0xff]  ;;  %v392_v53 = vld [vmem:[%s2148_s7 + $0x5e0] sm:$0xff] }
  0xc3   : > { %850 = vmatmul.mubr.f32.gmra.mrb[62].mxu0 %v297_v54  ;;  %1930 = vmatmul.mubr.msk.f32.gmra.mrb[62].mxu1 %vm433_vm1, %v299_v55  ;;  %v345_v54 = vld [vmem:[%s2148_s7 + $0x468] sm:$0xff]  ;;  %v395_v55 = vld [vmem:[%s2148_s7 + $0x5f8] sm:$0xff] }
  0xc4   : > { %854 = vmatprep.mubr.f32.mxu0 %v301_v56  ;;  %1932 = vmatprep.mubr.msk.f32.mxu1 %vm433_vm1, %v302_v57 }
  0xc7   : > { %855 = vmatmul.mubr.f32.gmra.mrb[64].mxu0 %v300_v58  ;;  %1933 = vmatmul.mubr.msk.f32.gmra.mrb[64].mxu1 %vm433_vm1, %v305_v59 }
  0xc8   : > { %859 = vmatprep.mubr.f32.mxu0 %v304_v60  ;;  %1935 = vmatprep.mubr.msk.f32.mxu1 %vm433_vm1, %v308_v61 }
  0xcb   : > { %860 = vmatmul.mubr.f32.gmra.mrb[66].mxu0 %v303_v62  ;;  %1936 = vmatmul.mubr.msk.f32.gmra.mrb[66].mxu1 %vm433_vm1, %v311_v63 }
  0xcc   : > { %864 = vmatprep.mubr.f32.mxu0 %v307_v0  ;;  %1938 = vmatprep.mubr.msk.f32.mxu1 %vm433_vm1, %v314_v1 }
  0xcf   : > { %865 = vmatmul.mubr.f32.gmra.mrb[68].mxu0 %v306_v2  ;;  %1939 = vmatmul.mubr.msk.f32.gmra.mrb[68].mxu1 %vm433_vm1, %v317_v3 }
  0xd0   : > { %869 = vmatprep.mubr.f32.mxu0 %v310_v4  ;;  %1941 = vmatprep.mubr.msk.f32.mxu1 %vm433_vm1, %v320_v5 }
  0xd3   : > { %870 = vmatmul.mubr.f32.gmra.mrb[70].mxu0 %v309_v6  ;;  %1942 = vmatmul.mubr.msk.f32.gmra.mrb[70].mxu1 %vm433_vm1, %v323_v7 }
  0xd4   : > { %874 = vmatprep.mubr.f32.mxu0 %v313_v8  ;;  %1944 = vmatprep.mubr.msk.f32.mxu1 %vm433_vm1, %v326_v9 }
  0xd7   : > { %875 = vmatmul.mubr.f32.gmra.mrb[72].mxu0 %v312_v10  ;;  %1945 = vmatmul.mubr.msk.f32.gmra.mrb[72].mxu1 %vm433_vm1, %v329_v11 }
  0xd8   : > { %879 = vmatprep.mubr.f32.mxu0 %v316_v12  ;;  %1947 = vmatprep.mubr.msk.f32.mxu1 %vm433_vm1, %v332_v13 }
  0xdb   : > { %880 = vmatmul.mubr.f32.gmra.mrb[74].mxu0 %v315_v14  ;;  %1948 = vmatmul.mubr.msk.f32.gmra.mrb[74].mxu1 %vm433_vm1, %v335_v15 }
  0xdc   : > { %884 = vmatprep.mubr.f32.mxu0 %v319_v16  ;;  %1950 = vmatprep.mubr.msk.f32.mxu1 %vm433_vm1, %v338_v17 }
  0xdf   : > { %885 = vmatmul.mubr.f32.gmra.mrb[76].mxu0 %v318_v18  ;;  %1951 = vmatmul.mubr.msk.f32.gmra.mrb[76].mxu1 %vm433_vm1, %v341_v19 }
  0xe0   : > { %889 = vmatprep.mubr.f32.mxu0 %v322_v20  ;;  %1953 = vmatprep.mubr.msk.f32.mxu1 %vm433_vm1, %v344_v21 }
  0xe3   : > { %890 = vmatmul.mubr.f32.gmra.mrb[78].mxu0 %v321_v22  ;;  %1954 = vmatmul.mubr.msk.f32.gmra.mrb[78].mxu1 %vm433_vm1, %v347_v23 }
  0xe4   : > { %894 = vmatprep.mubr.f32.mxu0 %v325_v24  ;;  %1956 = vmatprep.mubr.msk.f32.mxu1 %vm433_vm1, %v350_v25 }
  0xe7   : > { %895 = vmatmul.mubr.f32.gmra.mrb[80].mxu0 %v324_v26  ;;  %1957 = vmatmul.mubr.msk.f32.gmra.mrb[80].mxu1 %vm433_vm1, %v353_v27 }
  0xe8   : > { %899 = vmatprep.mubr.f32.mxu0 %v328_v28  ;;  %1959 = vmatprep.mubr.msk.f32.mxu1 %vm433_vm1, %v356_v29 }
  0xeb   : > { %900 = vmatmul.mubr.f32.gmra.mrb[82].mxu0 %v327_v30  ;;  %1960 = vmatmul.mubr.msk.f32.gmra.mrb[82].mxu1 %vm433_vm1, %v359_v31 }
  0xec   : > { %904 = vmatprep.mubr.f32.mxu0 %v331_v32  ;;  %1962 = vmatprep.mubr.msk.f32.mxu1 %vm433_vm1, %v362_v33 }
  0xef   : > { %905 = vmatmul.mubr.f32.gmra.mrb[84].mxu0 %v330_v34  ;;  %1963 = vmatmul.mubr.msk.f32.gmra.mrb[84].mxu1 %vm433_vm1, %v365_v35 }
  0xf0   : > { %909 = vmatprep.mubr.f32.mxu0 %v334_v36  ;;  %1965 = vmatprep.mubr.msk.f32.mxu1 %vm433_vm1, %v368_v37 }
  0xf3   : > { %910 = vmatmul.mubr.f32.gmra.mrb[86].mxu0 %v333_v38  ;;  %1966 = vmatmul.mubr.msk.f32.gmra.mrb[86].mxu1 %vm433_vm1, %v371_v39 }
  0xf4   : > { %914 = vmatprep.mubr.f32.mxu0 %v337_v40  ;;  %1968 = vmatprep.mubr.msk.f32.mxu1 %vm433_vm1, %v374_v41 }
  0xf7   : > { %915 = vmatmul.mubr.f32.gmra.mrb[88].mxu0 %v336_v42  ;;  %1969 = vmatmul.mubr.msk.f32.gmra.mrb[88].mxu1 %vm433_vm1, %v377_v43 }
  0xf8   : > { %919 = vmatprep.mubr.f32.mxu0 %v340_v44  ;;  %1971 = vmatprep.mubr.msk.f32.mxu1 %vm433_vm1, %v380_v45 }
  0xfb   : > { %920 = vmatmul.mubr.f32.gmra.mrb[90].mxu0 %v339_v46  ;;  %1972 = vmatmul.mubr.msk.f32.gmra.mrb[90].mxu1 %vm433_vm1, %v383_v47 }
  0xfc   : > { %924 = vmatprep.mubr.f32.mxu0 %v343_v48  ;;  %1974 = vmatprep.mubr.msk.f32.mxu1 %vm433_vm1, %v386_v49 }
  0xff   : > { %925 = vmatmul.mubr.f32.gmra.mrb[92].mxu0 %v342_v50  ;;  %1975 = vmatmul.mubr.msk.f32.gmra.mrb[92].mxu1 %vm433_vm1, %v389_v51 }
 0x100   : > { %929 = vmatprep.mubr.f32.mxu0 %v346_v52  ;;  %1977 = vmatprep.mubr.msk.f32.mxu1 %vm433_vm1, %v392_v53 }
 0x103   : > { %930 = vmatmul.mubr.f32.gmra.mrb[94].mxu0 %v345_v54  ;;  %1978 = vmatmul.mubr.msk.f32.gmra.mrb[94].mxu1 %vm433_vm1, %v395_v55 }
 0x11a   : > { %v2529_v56 = vpop.f32.mrb[0].mxu1  ;;  %v2531_v57 = vpop.f32.mrb[0].mxu0 }
 0x11b   : > { %v938_v58 = vpop.f32.mrb[1].mxu1  ;;  %v698_v59 = vpop.f32.mrb[1].mxu0 }
 0x11c   : > { %v2594_v59 = vld [vmem:[%s2938_s2] ss:$0 sm:$0xff] }
 0x11e   : > { %v2533_v60 = vpop.f32.mrb[2].mxu1  ;;  %v701_v61 = vpop.f32.mrb[2].mxu0 }
 0x11f   : > { %v943_v62 = vpop.f32.mrb[3].mxu1  ;;  %v703_v63 = vpop.f32.mrb[3].mxu0 }
 0x122   : > { %v2535_v0 = vpop.f32.mrb[4].mxu1  ;;  %v2537_v1 = vpop.f32.mrb[4].mxu0 }
 0x123   : > { %v948_v2 = vpop.f32.mrb[5].mxu1  ;;  %v708_v3 = vpop.f32.mrb[5].mxu0 }
 0x126   : > { %v2539_v4 = vpop.f32.mrb[6].mxu1  ;;  %v2541_v5 = vpop.f32.mrb[6].mxu0 }
 0x127   : > { %v953_v6 = vpop.f32.mrb[7].mxu1  ;;  %v713_v7 = vpop.f32.mrb[7].mxu0 }
 0x128   : > { %v2601_v6 = vld [vmem:[%s2939_s3] ss:$0 sm:$0xff] }
 0x12a   : > { %v2543_v8 = vpop.f32.mrb[8].mxu1  ;;  %v2545_v9 = vpop.f32.mrb[8].mxu0 }
 0x12b   : > { %v958_v10 = vpop.f32.mrb[9].mxu1  ;;  %v718_v11 = vpop.f32.mrb[9].mxu0 }
 0x12e   : > { %v2547_v12 = vpop.f32.mrb[10].mxu1  ;;  %v2549_v13 = vpop.f32.mrb[10].mxu0 }
 0x12f   : > { %v963_v14 = vpop.f32.mrb[11].mxu1  ;;  %v723_v15 = vpop.f32.mrb[11].mxu0 }
 0x132   : > { %v2551_v16 = vpop.f32.mrb[12].mxu1  ;;  %v2553_v17 = vpop.f32.mrb[12].mxu0 }
 0x133   : > { %v968_v18 = vpop.f32.mrb[13].mxu1  ;;  %v728_v19 = vpop.f32.mrb[13].mxu0 }
 0x136   : > { %v2555_v20 = vpop.f32.mrb[14].mxu1  ;;  %v2557_v21 = vpop.f32.mrb[14].mxu0 }
 0x137   : > { %v973_v22 = vpop.f32.mrb[15].mxu1  ;;  %v733_v23 = vpop.f32.mrb[15].mxu0 }
 0x13a   : > { %v2559_v24 = vpop.f32.mrb[16].mxu1  ;;  %v2561_v25 = vpop.f32.mrb[16].mxu0 }
 0x13b   : > { %v978_v26 = vpop.f32.mrb[17].mxu1  ;;  %v738_v27 = vpop.f32.mrb[17].mxu0 }
 0x13e   : > { %v2563_v28 = vpop.f32.mrb[18].mxu1  ;;  %v2565_v29 = vpop.f32.mrb[18].mxu0 }
 0x13f   : > { %v983_v30 = vpop.f32.mrb[19].mxu1  ;;  %v743_v31 = vpop.f32.mrb[19].mxu0 }
 0x142   : > { %v2567_v32 = vpop.f32.mrb[20].mxu1  ;;  %v2569_v33 = vpop.f32.mrb[20].mxu0 }
 0x143   : > { %v988_v34 = vpop.f32.mrb[21].mxu1  ;;  %v748_v35 = vpop.f32.mrb[21].mxu0 }
 0x146   : > { %v2571_v36 = vpop.f32.mrb[22].mxu1  ;;  %v2573_v37 = vpop.f32.mrb[22].mxu0 }
 0x147   : > { %v993_v38 = vpop.f32.mrb[23].mxu1  ;;  %v753_v39 = vpop.f32.mrb[23].mxu0 }
 0x14a   : > { %v2575_v40 = vpop.f32.mrb[24].mxu1  ;;  %v2577_v41 = vpop.f32.mrb[24].mxu0 }
 0x14b   : > { %v998_v42 = vpop.f32.mrb[25].mxu1  ;;  %v758_v43 = vpop.f32.mrb[25].mxu0 }
 0x14e   : > { %v2579_v44 = vpop.f32.mrb[26].mxu1  ;;  %v2581_v45 = vpop.f32.mrb[26].mxu0 }
 0x14f   : > { %v1003_v46 = vpop.f32.mrb[27].mxu1  ;;  %v763_v47 = vpop.f32.mrb[27].mxu0 }
 0x152   : > { %v2583_v48 = vpop.f32.mrb[28].mxu1  ;;  %v2585_v49 = vpop.f32.mrb[28].mxu0 }
 0x153   : > { %v1008_v50 = vpop.f32.mrb[29].mxu1  ;;  %v768_v51 = vpop.f32.mrb[29].mxu0 }
 0x156   : > { %v2587_v52 = vpop.f32.mrb[30].mxu1  ;;  %v2589_v53 = vpop.f32.mrb[30].mxu0 }
 0x157   : > { %v1013_v54 = vpop.f32.mrb[31].mxu1  ;;  %v773_v55 = vpop.f32.mrb[31].mxu0 }
 0x15a   : > { %v1886_v58 = vpop.f32.mrb[32].mxu1  ;;  %v2596_v62 = vpop.f32.mrb[32].mxu0 }
 0x15b   : > { %v1087_v63 = vadd.f32 %v1886_v58, %v701_v61  ;;  %v1081_v2 = vpop.f32.mrb[33].mxu1  ;;  %v778_v3 = vpop.f32.mrb[33].mxu0 }
 0x15c   : > { %v1082_v7 = vadd.f32 %v1081_v2, %v2531_v57 }
 0x15d   : > { %v1408_v10 = vmul.f32 %v2594_v59, %v1087_v63 }
 0x15e   : > { %v1407_v11 = vmul.f32 %v2594_v59, %v1082_v7  ;;  %v1889_v14 = vpop.f32.mrb[34].mxu1  ;;  %v2607_v15 = vpop.f32.mrb[34].mxu0 }
 0x15f   : > { %v1479_v18 = vadd.f32 %v2601_v6, %v1408_v10  ;;  %v1097_v61 = vadd.f32 %v1889_v14, %v2541_v5  ;;  %v1091_v19 = vpop.f32.mrb[35].mxu1  ;;  %v783_v22 = vpop.f32.mrb[35].mxu0 }
 0x160   : > { %v1478_v57 = vadd.f32 %v2601_v6, %v1407_v11  ;;  %v1092_v23 = vadd.f32 %v1091_v19, %v2537_v1 }
 0x161   : > { %v1543_v26 = vmax.f32 %v1479_v18, 0.0  ;;  %v1410_v27 = vmul.f32 %v2594_v59, %v1097_v61 }
 0x162   : > { %v1542_v30 = vmax.f32 %v1478_v57, 0.0  ;;  %v1409_v5 = vmul.f32 %v2594_v59, %v1092_v23  ;;  %v1892_v31 = vpop.f32.mrb[36].mxu1  ;;  %v2620_v34 = vpop.f32.mrb[36].mxu0 }
 0x163   : > { %1608 = vst.msk [vmem:[%s2614_s6 + $0x8] sm:$0xff] %vm1606_vm2, %v1543_v26  ;;  %v1481_v35 = vadd.f32 %v2601_v6, %v1410_v27  ;;  %v1107_v38 = vadd.f32 %v1892_v31, %v2549_v13  ;;  %v1101_v39 = vpop.f32.mrb[37].mxu1  ;;  %v788_v42 = vpop.f32.mrb[37].mxu0 }
 0x164   : > { %1607 = vst.msk [vmem:[%s2614_s6] sm:$0xff] %vm1606_vm2, %v1542_v30  ;;  %v1480_v1 = vadd.f32 %v2601_v6, %v1409_v5  ;;  %v1102_v43 = vadd.f32 %v1101_v39, %v2545_v9 }
 0x165   : > { %v1545_v46 = vmax.f32 %v1481_v35, 0.0  ;;  %v1412_v47 = vmul.f32 %v2594_v59, %v1107_v38 }
 0x166   : > { %v1544_v50 = vmax.f32 %v1480_v1, 0.0  ;;  %v1411_v51 = vmul.f32 %v2594_v59, %v1102_v43  ;;  %v1895_v54 = vpop.f32.mrb[38].mxu1  ;;  %v2632_v55 = vpop.f32.mrb[38].mxu0 }
 0x167   : > { %1610 = vst.msk [vmem:[%s2614_s6 + $0x18] sm:$0xff] %vm1606_vm2, %v1545_v46  ;;  %v1483_v13 = vadd.f32 %v2601_v6, %v1412_v47  ;;  %v1117_v58 = vadd.f32 %v1895_v54, %v2557_v21  ;;  %v1111_v63 = vpop.f32.mrb[39].mxu1  ;;  %v793_v2 = vpop.f32.mrb[39].mxu0 }
 0x168   : > { %1609 = vst.msk [vmem:[%s2614_s6 + $0x10] sm:$0xff] %vm1606_vm2, %v1544_v50  ;;  %v1482_v9 = vadd.f32 %v2601_v6, %v1411_v51  ;;  %v1112_v3 = vadd.f32 %v1111_v63, %v2553_v17 }
 0x169   : > { %v1547_v7 = vmax.f32 %v1483_v13, 0.0  ;;  %v1414_v10 = vmul.f32 %v2594_v59, %v1117_v58 }
 0x16a   : > { %v1546_v11 = vmax.f32 %v1482_v9, 0.0  ;;  %v1413_v14 = vmul.f32 %v2594_v59, %v1112_v3  ;;  %v1898_v18 = vpop.f32.mrb[40].mxu1  ;;  %v2644_v61 = vpop.f32.mrb[40].mxu0 }
 0x16b   : > { %1612 = vst.msk [vmem:[%s2614_s6 + $0x28] sm:$0xff] %vm1606_vm2, %v1547_v7  ;;  %v1485_v21 = vadd.f32 %v2601_v6, %v1414_v10  ;;  %v1127_v19 = vadd.f32 %v1898_v18, %v2565_v29  ;;  %v1121_v22 = vpop.f32.mrb[41].mxu1  ;;  %v798_v57 = vpop.f32.mrb[41].mxu0 }
 0x16c   : > { %1611 = vst.msk [vmem:[%s2614_s6 + $0x20] sm:$0xff] %vm1606_vm2, %v1546_v11  ;;  %v1484_v17 = vadd.f32 %v2601_v6, %v1413_v14  ;;  %v1122_v23 = vadd.f32 %v1121_v22, %v2561_v25 }
 0x16d   : > { %v1549_v26 = vmax.f32 %v1485_v21, 0.0  ;;  %v1416_v27 = vmul.f32 %v2594_v59, %v1127_v19 }
 0x16e   : > { %v1548_v30 = vmax.f32 %v1484_v17, 0.0  ;;  %v1415_v5 = vmul.f32 %v2594_v59, %v1122_v23  ;;  %v1901_v31 = vpop.f32.mrb[42].mxu1  ;;  %v2656_v35 = vpop.f32.mrb[42].mxu0 }
 0x16f   : > { %1614 = vst.msk [vmem:[%s2614_s6 + $0x38] sm:$0xff] %vm1606_vm2, %v1549_v26  ;;  %v1487_v29 = vadd.f32 %v2601_v6, %v1416_v27  ;;  %v1137_v38 = vadd.f32 %v1901_v31, %v2573_v37  ;;  %v1131_v39 = vpop.f32.mrb[43].mxu1  ;;  %v803_v42 = vpop.f32.mrb[43].mxu0 }
 0x170   : > { %1613 = vst.msk [vmem:[%s2614_s6 + $0x30] sm:$0xff] %vm1606_vm2, %v1548_v30  ;;  %v1486_v25 = vadd.f32 %v2601_v6, %v1415_v5  ;;  %v1132_v1 = vadd.f32 %v1131_v39, %v2569_v33 }
 0x171   : > { %v1551_v43 = vmax.f32 %v1487_v29, 0.0  ;;  %v1418_v46 = vmul.f32 %v2594_v59, %v1137_v38 }
 0x172   : > { %v1550_v47 = vmax.f32 %v1486_v25, 0.0  ;;  %v1417_v50 = vmul.f32 %v2594_v59, %v1132_v1  ;;  %v1904_v51 = vpop.f32.mrb[44].mxu1  ;;  %v2668_v54 = vpop.f32.mrb[44].mxu0 }
 0x173   : > { %1616 = vst.msk [vmem:[%s2614_s6 + $0x48] sm:$0xff] %vm1606_vm2, %v1551_v43  ;;  %v1489_v37 = vadd.f32 %v2601_v6, %v1418_v46  ;;  %v1147_v13 = vadd.f32 %v1904_v51, %v2581_v45  ;;  %v1141_v58 = vpop.f32.mrb[45].mxu1  ;;  %v808_v63 = vpop.f32.mrb[45].mxu0 }
 0x174   : > { %1615 = vst.msk [vmem:[%s2614_s6 + $0x40] sm:$0xff] %vm1606_vm2, %v1550_v47  ;;  %v1488_v33 = vadd.f32 %v2601_v6, %v1417_v50  ;;  %v1142_v2 = vadd.f32 %v1141_v58, %v2577_v41 }
 0x175   : > { %v1553_v9 = vmax.f32 %v1489_v37, 0.0  ;;  %v1420_v3 = vmul.f32 %v2594_v59, %v1147_v13 }
 0x176   : > { %v1552_v7 = vmax.f32 %v1488_v33, 0.0  ;;  %v1419_v10 = vmul.f32 %v2594_v59, %v1142_v2  ;;  %v1907_v11 = vpop.f32.mrb[46].mxu1  ;;  %v811_v14 = vpop.f32.mrb[46].mxu0 }
 0x177   : > { %1618 = vst.msk [vmem:[%s2614_s6 + $0x58] sm:$0xff] %vm1606_vm2, %v1553_v9  ;;  %v1491_v45 = vadd.f32 %v2601_v6, %v1420_v3  ;;  %v1157_v18 = vadd.f32 %v1907_v11, %v2589_v53  ;;  %v1151_v21 = vpop.f32.mrb[47].mxu1  ;;  %v813_v19 = vpop.f32.mrb[47].mxu0 }
 0x178   : > { %1617 = vst.msk [vmem:[%s2614_s6 + $0x50] sm:$0xff] %vm1606_vm2, %v1552_v7  ;;  %v1490_v41 = vadd.f32 %v2601_v6, %v1419_v10  ;;  %v1152_v22 = vadd.f32 %v1151_v21, %v2585_v49 }
 0x179   : > { %v1555_v57 = vmax.f32 %v1491_v45, 0.0  ;;  %v1422_v17 = vmul.f32 %v2594_v59, %v1157_v18 }
 0x17a   : > { %v1554_v23 = vmax.f32 %v1490_v41, 0.0  ;;  %v1421_v26 = vmul.f32 %v2594_v59, %v1152_v22  ;;  %v1910_v27 = vpop.f32.mrb[48].mxu1  ;;  %v2690_v30 = vpop.f32.mrb[48].mxu0 }
 0x17b   : > { %1620 = vst.msk [vmem:[%s2614_s6 + $0x68] sm:$0xff] %vm1606_vm2, %v1555_v57  ;;  %v1493_v53 = vadd.f32 %v2601_v6, %v1422_v17  ;;  %v1167_v5 = vadd.f32 %v1910_v27, %v2607_v15  ;;  %v1161_v31 = vpop.f32.mrb[49].mxu1  ;;  %v818_v29 = vpop.f32.mrb[49].mxu0 }
 0x17c   : > { %1619 = vst.msk [vmem:[%s2614_s6 + $0x60] sm:$0xff] %vm1606_vm2, %v1554_v23  ;;  %v1492_v49 = vadd.f32 %v2601_v6, %v1421_v26  ;;  %v1162_v38 = vadd.f32 %v1161_v31, %v2596_v62 }
 0x17d   : > { %v1557_v39 = vmax.f32 %v1493_v53, 0.0  ;;  %v1424_v42 = vmul.f32 %v2594_v59, %v1167_v5 }
 0x17e   : > { %v1556_v25 = vmax.f32 %v1492_v49, 0.0  ;;  %v1423_v1 = vmul.f32 %v2594_v59, %v1162_v38  ;;  %v1913_v43 = vpop.f32.mrb[50].mxu1  ;;  %v821_v46 = vpop.f32.mrb[50].mxu0 }
 0x17f   : > { %1622 = vst.msk [vmem:[%s2614_s6 + $0x78] sm:$0xff] %vm1606_vm2, %v1557_v39  ;;  %v1495_v15 = vadd.f32 %v2601_v6, %v1424_v42  ;;  %v1177_v47 = vadd.f32 %v1913_v43, %v2632_v55  ;;  %v1171_v50 = vpop.f32.mrb[51].mxu1  ;;  %v823_v51 = vpop.f32.mrb[51].mxu0 }
 0x180   : > { %1621 = vst.msk [vmem:[%s2614_s6 + $0x70] sm:$0xff] %vm1606_vm2, %v1556_v25  ;;  %v1494_v62 = vadd.f32 %v2601_v6, %v1423_v1  ;;  %v1172_v37 = vadd.f32 %v1171_v50, %v2620_v34 }
 0x181   : > { %v1559_v13 = vmax.f32 %v1495_v15, 0.0  ;;  %v1426_v58 = vmul.f32 %v2594_v59, %v1177_v47 }
 0x182   : > { %v1558_v63 = vmax.f32 %v1494_v62, 0.0  ;;  %v1425_v33 = vmul.f32 %v2594_v59, %v1172_v37  ;;  %v1916_v2 = vpop.f32.mrb[52].mxu1  ;;  %v826_v9 = vpop.f32.mrb[52].mxu0 }
 0x183   : > { %1624 = vst.msk [vmem:[%s2614_s6 + $0x88] sm:$0xff] %vm1606_vm2, %v1559_v13  ;;  %v1497_v55 = vadd.f32 %v2601_v6, %v1426_v58  ;;  %v1187_v3 = vadd.f32 %v1916_v2, %v2656_v35  ;;  %v1181_v7 = vpop.f32.mrb[53].mxu1  ;;  %v828_v10 = vpop.f32.mrb[53].mxu0 }
 0x184   : > { %1623 = vst.msk [vmem:[%s2614_s6 + $0x80] sm:$0xff] %vm1606_vm2, %v1558_v63  ;;  %v1496_v34 = vadd.f32 %v2601_v6, %v1425_v33  ;;  %v1182_v11 = vadd.f32 %v1181_v7, %v2644_v61 }
 0x185   : > { %v1561_v45 = vmax.f32 %v1497_v55, 0.0  ;;  %v1428_v18 = vmul.f32 %v2594_v59, %v1187_v3 }
 0x186   : > { %v1560_v21 = vmax.f32 %v1496_v34, 0.0  ;;  %v1427_v19 = vmul.f32 %v2594_v59, %v1182_v11  ;;  %v1919_v41 = vpop.f32.mrb[54].mxu1  ;;  %v831_v22 = vpop.f32.mrb[54].mxu0 }
 0x187   : > { %1626 = vst.msk [vmem:[%s2614_s6 + $0x98] sm:$0xff] %vm1606_vm2, %v1561_v45  ;;  %v1499_v35 = vadd.f32 %v2601_v6, %v1428_v18  ;;  %v1197_v57 = vadd.f32 %v1919_v41, %v811_v14  ;;  %v1191_v17 = vpop.f32.mrb[55].mxu1  ;;  %v833_v23 = vpop.f32.mrb[55].mxu0 }
 0x188   : > { %1625 = vst.msk [vmem:[%s2614_s6 + $0x90] sm:$0xff] %vm1606_vm2, %v1560_v21  ;;  %v1498_v61 = vadd.f32 %v2601_v6, %v1427_v19  ;;  %v1192_v26 = vadd.f32 %v1191_v17, %v2668_v54 }
 0x189   : > { %v1563_v27 = vmax.f32 %v1499_v35, 0.0  ;;  %v1430_v53 = vmul.f32 %v2594_v59, %v1197_v57 }
 0x18a   : > { %v1562_v5 = vmax.f32 %v1498_v61, 0.0  ;;  %v1429_v31 = vmul.f32 %v2594_v59, %v1192_v26  ;;  %v1922_v29 = vpop.f32.mrb[56].mxu1  ;;  %v836_v49 = vpop.f32.mrb[56].mxu0 }
 0x18b   : > { %1628 = vst.msk [vmem:[%s2614_s6 + $0xa8] sm:$0xff] %vm1606_vm2, %v1563_v27  ;;  %v1501_v14 = vadd.f32 %v2601_v6, %v1430_v53  ;;  %v1207_v38 = vadd.f32 %v1922_v29, %v821_v46  ;;  %v1201_v39 = vpop.f32.mrb[57].mxu1  ;;  %v838_v42 = vpop.f32.mrb[57].mxu0 }
 0x18c   : > { %1627 = vst.msk [vmem:[%s2614_s6 + $0xa0] sm:$0xff] %vm1606_vm2, %v1562_v5  ;;  %v1500_v54 = vadd.f32 %v2601_v6, %v1429_v31  ;;  %v1202_v25 = vadd.f32 %v1201_v39, %v2690_v30 }
 0x18d   : > { %v1565_v1 = vmax.f32 %v1501_v14, 0.0  ;;  %v1432_v43 = vmul.f32 %v2594_v59, %v1207_v38 }
 0x18e   : > { %v1564_v15 = vmax.f32 %v1500_v54, 0.0  ;;  %v1431_v47 = vmul.f32 %v2594_v59, %v1202_v25  ;;  %v1925_v50 = vpop.f32.mrb[58].mxu1  ;;  %v841_v51 = vpop.f32.mrb[58].mxu0 }
 0x18f   : > { %1630 = vst.msk [vmem:[%s2614_s6 + $0xb8] sm:$0xff] %vm1606_vm2, %v1565_v1  ;;  %v1503_v46 = vadd.f32 %v2601_v6, %v1432_v43  ;;  %v1217_v62 = vadd.f32 %v1925_v50, %v831_v22  ;;  %v1211_v37 = vpop.f32.mrb[59].mxu1  ;;  %v843_v13 = vpop.f32.mrb[59].mxu0 }
 0x190   : > { %1629 = vst.msk [vmem:[%s2614_s6 + $0xb0] sm:$0xff] %vm1606_vm2, %v1564_v15  ;;  %v1502_v30 = vadd.f32 %v2601_v6, %v1431_v47  ;;  %v1212_v58 = vadd.f32 %v1211_v37, %v826_v9 }
 0x191   : > { %v1567_v63 = vmax.f32 %v1503_v46, 0.0  ;;  %v1434_v33 = vmul.f32 %v2594_v59, %v1217_v62 }
 0x192   : > { %v1566_v2 = vmax.f32 %v1502_v30, 0.0  ;;  %v1433_v55 = vmul.f32 %v2594_v59, %v1212_v58  ;;  %v1928_v3 = vpop.f32.mrb[60].mxu1  ;;  %v846_v7 = vpop.f32.mrb[60].mxu0 }
 0x193   : > { %1632 = vst.msk [vmem:[%s2614_s6 + $0xc8] sm:$0xff] %vm1606_vm2, %v1567_v63  ;;  %v1505_v10 = vadd.f32 %v2601_v6, %v1434_v33  ;;  %v1227_v34 = vadd.f32 %v1928_v3, %v841_v51  ;;  %v1221_v11 = vpop.f32.mrb[61].mxu1  ;;  %v848_v45 = vpop.f32.mrb[61].mxu0 }
 0x194   : > { %1631 = vst.msk [vmem:[%s2614_s6 + $0xc0] sm:$0xff] %vm1606_vm2, %v1566_v2  ;;  %v1504_v9 = vadd.f32 %v2601_v6, %v1433_v55  ;;  %v1222_v18 = vadd.f32 %v1221_v11, %v836_v49 }
 0x195   : > { %v1569_v21 = vmax.f32 %v1505_v10, 0.0  ;;  %v1436_v19 = vmul.f32 %v2594_v59, %v1227_v34 }
 0x196   : > { %v1568_v41 = vmax.f32 %v1504_v9, 0.0  ;;  %v1435_v22 = vmul.f32 %v2594_v59, %v1222_v18  ;;  %v1931_v35 = vpop.f32.mrb[62].mxu1  ;;  %v851_v57 = vpop.f32.mrb[62].mxu0 }
 0x197   : > { %1634 = vst.msk [vmem:[%s2614_s6 + $0xd8] sm:$0xff] %vm1606_vm2, %v1569_v21  ;;  %v1507_v17 = vadd.f32 %v2601_v6, %v1436_v19  ;;  %v1237_v23 = vadd.f32 %v1931_v35, %v851_v57  ;;  %v1231_v61 = vpop.f32.mrb[63].mxu1  ;;  %v853_v26 = vpop.f32.mrb[63].mxu0 }
 0x198   : > { %1633 = vst.msk [vmem:[%s2614_s6 + $0xd0] sm:$0xff] %vm1606_vm2, %v1568_v41  ;;  %v1506_v27 = vadd.f32 %v2601_v6, %v1435_v22  ;;  %v1232_v53 = vadd.f32 %v1231_v61, %v846_v7 }
 0x199   : > { %v1571_v5 = vmax.f32 %v1507_v17, 0.0  ;;  %v1438_v31 = vmul.f32 %v2594_v59, %v1237_v23 }
 0x19a   : > { %v1570_v29 = vmax.f32 %v1506_v27, 0.0  ;;  %v1437_v49 = vmul.f32 %v2594_v59, %v1232_v53  ;;  %v1934_v14 = vpop.f32.mrb[64].mxu1  ;;  %v856_v38 = vpop.f32.mrb[64].mxu0 }
 0x19b   : > { %1636 = vst.msk [vmem:[%s2614_s6 + $0xe8] sm:$0xff] %vm1606_vm2, %v1571_v5  ;;  %v1509_v39 = vadd.f32 %v2601_v6, %v1438_v31  ;;  %v1241_v42 = vpop.f32.mrb[65].mxu1  ;;  %v858_v54 = vpop.f32.mrb[65].mxu0 }
 0x19c   : > { %1635 = vst.msk [vmem:[%s2614_s6 + $0xe0] sm:$0xff] %vm1606_vm2, %v1570_v29  ;;  %v1508_v25 = vadd.f32 %v2601_v6, %v1437_v49  ;;  %v1242_v1 = vadd.f32 %v1241_v42, %v856_v38 }
 0x19d   : > { %v1573_v43 = vmax.f32 %v1509_v39, 0.0 }
 0x19e   : > { %v1572_v15 = vmax.f32 %v1508_v25, 0.0  ;;  %v1439_v47 = vmul.f32 %v2594_v59, %v1242_v1  ;;  %v861_v50 = vpop.f32.mrb[66].mxu0  ;;  %v1937_v51 = vpop.f32.mrb[66].mxu1 }
 0x19f   : > { %1638 = vst.msk [vmem:[%s2614_s6 + $0xf8] sm:$0xff] %vm1606_vm2, %v1573_v43  ;;  %v1247_v46 = vadd.f32 %v1934_v14, %v861_v50  ;;  %v1251_v62 = vpop.f32.mrb[67].mxu1  ;;  %v863_v37 = vpop.f32.mrb[67].mxu0 }
 0x1a0   : > { %1637 = vst.msk [vmem:[%s2614_s6 + $0xf0] sm:$0xff] %vm1606_vm2, %v1572_v15  ;;  %v1510_v13 = vadd.f32 %v2601_v6, %v1439_v47 }
 0x1a1   : > { %v1440_v30 = vmul.f32 %v2594_v59, %v1247_v46 }
 0x1a2   : > { %v1574_v58 = vmax.f32 %v1510_v13, 0.0  ;;  %v866_v63 = vpop.f32.mrb[68].mxu0  ;;  %v1940_v33 = vpop.f32.mrb[68].mxu1 }
 0x1a3   : > { %v1511_v2 = vadd.f32 %v2601_v6, %v1440_v30  ;;  %v1252_v55 = vadd.f32 %v1251_v62, %v866_v63  ;;  %v1261_v3 = vpop.f32.mrb[69].mxu1  ;;  %v868_v7 = vpop.f32.mrb[69].mxu0 }
 0x1a4   : > { %1639 = vst.msk [vmem:[%s2614_s6 + $0x100] sm:$0xff] %vm1606_vm2, %v1574_v58 }
 0x1a5   : > { %v1575_v10 = vmax.f32 %v1511_v2, 0.0  ;;  %v1441_v34 = vmul.f32 %v2594_v59, %v1252_v55 }
 0x1a6   : > { %v871_v11 = vpop.f32.mrb[70].mxu0  ;;  %v1943_v45 = vpop.f32.mrb[70].mxu1 }
 0x1a7   : > { %1640 = vst.msk [vmem:[%s2614_s6 + $0x108] sm:$0xff] %vm1606_vm2, %v1575_v10  ;;  %v1512_v9 = vadd.f32 %v2601_v6, %v1441_v34  ;;  %v1257_v18 = vadd.f32 %v1937_v51, %v871_v11  ;;  %v1271_v21 = vpop.f32.mrb[71].mxu1  ;;  %v873_v19 = vpop.f32.mrb[71].mxu0 }
 0x1a9   : > { %v1576_v41 = vmax.f32 %v1512_v9, 0.0  ;;  %v1442_v22 = vmul.f32 %v2594_v59, %v1257_v18 }
 0x1aa   : > { %v876_v35 = vpop.f32.mrb[72].mxu0  ;;  %v1946_v57 = vpop.f32.mrb[72].mxu1 }
 0x1ab   : > { %1641 = vst.msk [vmem:[%s2614_s6 + $0x110] sm:$0xff] %vm1606_vm2, %v1576_v41  ;;  %v1513_v17 = vadd.f32 %v2601_v6, %v1442_v22  ;;  %v1262_v23 = vadd.f32 %v1261_v3, %v876_v35  ;;  %v1281_v61 = vpop.f32.mrb[73].mxu1  ;;  %v878_v26 = vpop.f32.mrb[73].mxu0 }
 0x1ad   : > { %v1577_v27 = vmax.f32 %v1513_v17, 0.0  ;;  %v1443_v53 = vmul.f32 %v2594_v59, %v1262_v23 }
 0x1ae   : > { %v881_v5 = vpop.f32.mrb[74].mxu0  ;;  %v2789_v31 = vpop.f32.mrb[74].mxu1 }
 0x1af   : > { %1642 = vst.msk [vmem:[%s2614_s6 + $0x118] sm:$0xff] %vm1606_vm2, %v1577_v27  ;;  %v1514_v29 = vadd.f32 %v2601_v6, %v1443_v53  ;;  %v1267_v49 = vadd.f32 %v1940_v33, %v881_v5  ;;  %v1291_v14 = vpop.f32.mrb[75].mxu1  ;;  %v883_v38 = vpop.f32.mrb[75].mxu0 }
 0x1b1   : > { %v1578_v39 = vmax.f32 %v1514_v29, 0.0  ;;  %v1444_v42 = vmul.f32 %v2594_v59, %v1267_v49 }
 0x1b2   : > { %v886_v54 = vpop.f32.mrb[76].mxu0  ;;  %v2795_v25 = vpop.f32.mrb[76].mxu1 }
 0x1b3   : > { %1643 = vst.msk [vmem:[%s2614_s6 + $0x120] sm:$0xff] %vm1606_vm2, %v1578_v39  ;;  %v1515_v1 = vadd.f32 %v2601_v6, %v1444_v42  ;;  %v1272_v43 = vadd.f32 %v1271_v21, %v886_v54  ;;  %v2800_v15 = vpop.f32.mrb[77].mxu1  ;;  %v888_v47 = vpop.f32.mrb[77].mxu0 }
 0x1b5   : > { %v1579_v50 = vmax.f32 %v1515_v1, 0.0  ;;  %v1445_v51 = vmul.f32 %v2594_v59, %v1272_v43 }
 0x1b6   : > { %v891_v46 = vpop.f32.mrb[78].mxu0  ;;  %v2803_v62 = vpop.f32.mrb[78].mxu1 }
 0x1b7   : > { %1644 = vst.msk [vmem:[%s2614_s6 + $0x128] sm:$0xff] %vm1606_vm2, %v1579_v50  ;;  %v1516_v37 = vadd.f32 %v2601_v6, %v1445_v51  ;;  %v1277_v13 = vadd.f32 %v1943_v45, %v891_v46  ;;  %v2808_v30 = vpop.f32.mrb[79].mxu1  ;;  %v893_v58 = vpop.f32.mrb[79].mxu0 }
 0x1b9   : > { %v1580_v63 = vmax.f32 %v1516_v37, 0.0  ;;  %v1446_v33 = vmul.f32 %v2594_v59, %v1277_v13 }
 0x1ba   : > { %v896_v2 = vpop.f32.mrb[80].mxu0  ;;  %v1958_v55 = vpop.f32.mrb[80].mxu1 }
 0x1bb   : > { %1645 = vst.msk [vmem:[%s2614_s6 + $0x130] sm:$0xff] %vm1606_vm2, %v1580_v63  ;;  %v1517_v3 = vadd.f32 %v2601_v6, %v1446_v33  ;;  %v1282_v7 = vadd.f32 %v1281_v61, %v896_v2  ;;  %v1327_v10 = vadd.f32 %v1958_v55, %v2533_v60  ;;  %v1321_v34 = vpop.f32.mrb[81].mxu1  ;;  %v898_v11 = vpop.f32.mrb[81].mxu0 }
 0x1bc   : > { %v1322_v45 = vadd.f32 %v1321_v34, %v2529_v56 }
 0x1bd   : > { %v1581_v9 = vmax.f32 %v1517_v3, 0.0  ;;  %v1447_v18 = vmul.f32 %v2594_v59, %v1282_v7  ;;  %v1456_v21 = vmul.f32 %v2594_v59, %v1327_v10 }
 0x1be   : > { %v1455_v19 = vmul.f32 %v2594_v59, %v1322_v45  ;;  %v901_v41 = vpop.f32.mrb[82].mxu0  ;;  %v1961_v22 = vpop.f32.mrb[82].mxu1 }
 0x1bf   : > { %1646 = vst.msk [vmem:[%s2614_s6 + $0x138] sm:$0xff] %vm1606_vm2, %v1581_v9  ;;  %v1518_v35 = vadd.f32 %v2601_v6, %v1447_v18  ;;  %v1527_v60 = vadd.f32 %v2601_v6, %v1456_v21  ;;  %v1287_v17 = vadd.f32 %v1946_v57, %v901_v41  ;;  %v1337_v56 = vadd.f32 %v1961_v22, %v2539_v4  ;;  %v1331_v23 = vpop.f32.mrb[83].mxu1  ;;  %v903_v61 = vpop.f32.mrb[83].mxu0 }
 0x1c0   : > { %v1526_v26 = vadd.f32 %v2601_v6, %v1455_v19  ;;  %v1332_v27 = vadd.f32 %v1331_v23, %v2535_v0 }
 0x1c1   : > { %v1582_v53 = vmax.f32 %v1518_v35, 0.0  ;;  %v1591_v5 = vmax.f32 %v1527_v60, 0.0  ;;  %v1448_v29 = vmul.f32 %v2594_v59, %v1287_v17  ;;  %v1458_v49 = vmul.f32 %v2594_v59, %v1337_v56 }
 0x1c2   : > { %v1590_v38 = vmax.f32 %v1526_v26, 0.0  ;;  %v1457_v39 = vmul.f32 %v2594_v59, %v1332_v27  ;;  %v906_v42 = vpop.f32.mrb[84].mxu0  ;;  %v1964_v57 = vpop.f32.mrb[84].mxu1 }
 0x1c3   : > { %1647 = vst.msk [vmem:[%s2614_s6 + $0x140] sm:$0xff] %vm1606_vm2, %v1582_v53  ;;  %1656 = vst.msk [vmem:[%s2614_s6 + $0x188] sm:$0xff] %vm1606_vm2, %v1591_v5  ;;  %v1519_v4 = vadd.f32 %v2601_v6, %v1448_v29  ;;  %v1529_v0 = vadd.f32 %v2601_v6, %v1458_v49  ;;  %v1292_v54 = vadd.f32 %v1291_v14, %v906_v42  ;;  %v1341_v43 = vpop.f32.mrb[85].mxu1  ;;  %v908_v47 = vpop.f32.mrb[85].mxu0 }
 0x1c4   : > { %v1347_v1 = vadd.f32 %v1964_v57, %v2547_v12  ;;  %1655 = vst.msk [vmem:[%s2614_s6 + $0x180] sm:$0xff] %vm1606_vm2, %v1590_v38  ;;  %v1528_v50 = vadd.f32 %v2601_v6, %v1457_v39  ;;  %v1342_v51 = vadd.f32 %v1341_v43, %v2543_v8 }
 0x1c5   : > { %v1583_v46 = vmax.f32 %v1519_v4, 0.0  ;;  %v1593_v37 = vmax.f32 %v1529_v0, 0.0  ;;  %v1449_v13 = vmul.f32 %v2594_v59, %v1292_v54 }
 0x1c6   : > { %v1460_v58 = vmul.f32 %v2594_v59, %v1347_v1  ;;  %v1592_v63 = vmax.f32 %v1528_v50, 0.0  ;;  %v1459_v14 = vmul.f32 %v2594_v59, %v1342_v51  ;;  %v911_v33 = vpop.f32.mrb[86].mxu0  ;;  %v1967_v12 = vpop.f32.mrb[86].mxu1 }
 0x1c7   : > { %1648 = vst.msk [vmem:[%s2614_s6 + $0x148] sm:$0xff] %vm1606_vm2, %v1583_v46  ;;  %1658 = vst.msk [vmem:[%s2614_s6 + $0x198] sm:$0xff] %vm1606_vm2, %v1593_v37  ;;  %v1520_v2 = vadd.f32 %v2601_v6, %v1449_v13  ;;  %v1297_v55 = vadd.f32 %v2789_v31, %v911_v33  ;;  %v1357_v3 = vadd.f32 %v1967_v12, %v2555_v20  ;;  %v1351_v7 = vpop.f32.mrb[87].mxu1  ;;  %v913_v10 = vpop.f32.mrb[87].mxu0 }
 0x1c8   : > { %v1531_v8 = vadd.f32 %v2601_v6, %v1460_v58  ;;  %1657 = vst.msk [vmem:[%s2614_s6 + $0x190] sm:$0xff] %vm1606_vm2, %v1592_v63  ;;  %v1530_v34 = vadd.f32 %v2601_v6, %v1459_v14  ;;  %v1352_v11 = vadd.f32 %v1351_v7, %v2551_v16 }
 0x1c9   : > { %v1584_v45 = vmax.f32 %v1520_v2, 0.0  ;;  %v1450_v18 = vmul.f32 %v2594_v59, %v1297_v55  ;;  %v1462_v21 = vmul.f32 %v2594_v59, %v1357_v3 }
 0x1ca   : > { %v1595_v9 = vmax.f32 %v1531_v8, 0.0  ;;  %v1594_v19 = vmax.f32 %v1530_v34, 0.0  ;;  %v1461_v31 = vmul.f32 %v2594_v59, %v1352_v11  ;;  %v916_v41 = vpop.f32.mrb[88].mxu0  ;;  %v1970_v20 = vpop.f32.mrb[88].mxu1 }
 0x1cb   : > { %1649 = vst.msk [vmem:[%s2614_s6 + $0x150] sm:$0xff] %vm1606_vm2, %v1584_v45  ;;  %v1521_v22 = vadd.f32 %v2601_v6, %v1450_v18  ;;  %v1533_v16 = vadd.f32 %v2601_v6, %v1462_v21  ;;  %v1302_v35 = vadd.f32 %v2800_v15, %v916_v41  ;;  %v1367_v60 = vadd.f32 %v1970_v20, %v2563_v28  ;;  %v1361_v17 = vpop.f32.mrb[89].mxu1  ;;  %v918_v56 = vpop.f32.mrb[89].mxu0 }
 0x1cc   : > { %1660 = vst.msk [vmem:[%s2614_s6 + $0x1a8] sm:$0xff] %vm1606_vm2, %v1595_v9  ;;  %1659 = vst.msk [vmem:[%s2614_s6 + $0x1a0] sm:$0xff] %vm1606_vm2, %v1594_v19  ;;  %v1532_v23 = vadd.f32 %v2601_v6, %v1461_v31  ;;  %v1362_v61 = vadd.f32 %v1361_v17, %v2559_v24 }
 0x1cd   : > { %v1585_v26 = vmax.f32 %v1521_v22, 0.0  ;;  %v1597_v27 = vmax.f32 %v1533_v16, 0.0  ;;  %v1451_v53 = vmul.f32 %v2594_v59, %v1302_v35  ;;  %v1464_v5 = vmul.f32 %v2594_v59, %v1367_v60 }
 0x1ce   : > { %v1596_v29 = vmax.f32 %v1532_v23, 0.0  ;;  %v1463_v15 = vmul.f32 %v2594_v59, %v1362_v61  ;;  %v921_v49 = vpop.f32.mrb[90].mxu0  ;;  %v1973_v28 = vpop.f32.mrb[90].mxu1 }
 0x1cf   : > { %1650 = vst.msk [vmem:[%s2614_s6 + $0x158] sm:$0xff] %vm1606_vm2, %v1585_v26  ;;  %1662 = vst.msk [vmem:[%s2614_s6 + $0x1b8] sm:$0xff] %vm1606_vm2, %v1597_v27  ;;  %v1522_v38 = vadd.f32 %v2601_v6, %v1451_v53  ;;  %v1535_v24 = vadd.f32 %v2601_v6, %v1464_v5  ;;  %v1307_v39 = vadd.f32 %v2795_v25, %v921_v49  ;;  %v1371_v57 = vpop.f32.mrb[91].mxu1  ;;  %v923_v4 = vpop.f32.mrb[91].mxu0 }
 0x1d0   : > { %v1377_v42 = vadd.f32 %v1973_v28, %v2571_v36  ;;  %1661 = vst.msk [vmem:[%s2614_s6 + $0x1b0] sm:$0xff] %vm1606_vm2, %v1596_v29  ;;  %v1534_v0 = vadd.f32 %v2601_v6, %v1463_v15  ;;  %v1372_v54 = vadd.f32 %v1371_v57, %v2567_v32 }
 0x1d1   : > { %v1586_v1 = vmax.f32 %v1522_v38, 0.0  ;;  %v1599_v43 = vmax.f32 %v1535_v24, 0.0  ;;  %v1452_v47 = vmul.f32 %v2594_v59, %v1307_v39 }
 0x1d2   : > { %v1466_v50 = vmul.f32 %v2594_v59, %v1377_v42  ;;  %v1598_v51 = vmax.f32 %v1534_v0, 0.0  ;;  %v1465_v25 = vmul.f32 %v2594_v59, %v1372_v54  ;;  %v926_v46 = vpop.f32.mrb[92].mxu0  ;;  %v1976_v36 = vpop.f32.mrb[92].mxu1 }
 0x1d3   : > { %1651 = vst.msk [vmem:[%s2614_s6 + $0x160] sm:$0xff] %vm1606_vm2, %v1586_v1  ;;  %1664 = vst.msk [vmem:[%s2614_s6 + $0x1c8] sm:$0xff] %vm1606_vm2, %v1599_v43  ;;  %v1523_v37 = vadd.f32 %v2601_v6, %v1452_v47  ;;  %v1312_v13 = vadd.f32 %v2808_v30, %v926_v46  ;;  %v1387_v58 = vadd.f32 %v1976_v36, %v2579_v44  ;;  %v1381_v63 = vpop.f32.mrb[93].mxu1  ;;  %v928_v14 = vpop.f32.mrb[93].mxu0 }
 0x1d4   : > { %v1537_v32 = vadd.f32 %v2601_v6, %v1466_v50  ;;  %1663 = vst.msk [vmem:[%s2614_s6 + $0x1c0] sm:$0xff] %vm1606_vm2, %v1598_v51  ;;  %v1536_v33 = vadd.f32 %v2601_v6, %v1465_v25  ;;  %v1382_v12 = vadd.f32 %v1381_v63, %v2575_v40 }
 0x1d5   : > { %v1587_v2 = vmax.f32 %v1523_v37, 0.0  ;;  %v1453_v55 = vmul.f32 %v2594_v59, %v1312_v13  ;;  %v1468_v3 = vmul.f32 %v2594_v59, %v1387_v58 }
 0x1d6   : > { %v1601_v8 = vmax.f32 %v1537_v32, 0.0  ;;  %v1600_v7 = vmax.f32 %v1536_v33, 0.0  ;;  %v1467_v30 = vmul.f32 %v2594_v59, %v1382_v12  ;;  %v931_v10 = vpop.f32.mrb[94].mxu0  ;;  %v1979_v44 = vpop.f32.mrb[94].mxu1 }
 0x1d7   : > { %1652 = vst.msk [vmem:[%s2614_s6 + $0x168] sm:$0xff] %vm1606_vm2, %v1587_v2  ;;  %v1524_v34 = vadd.f32 %v2601_v6, %v1453_v55  ;;  %v1539_v40 = vadd.f32 %v2601_v6, %v1468_v3  ;;  %v1317_v11 = vadd.f32 %v2803_v62, %v931_v10  ;;  %v1397_v45 = vadd.f32 %v1979_v44, %v2587_v52  ;;  %v1391_v9 = vpop.f32.mrb[95].mxu1  ;;  %v933_v18 = vpop.f32.mrb[95].mxu0 }
 0x1d8   : > { %1666 = vst.msk [vmem:[%s2614_s6 + $0x1d8] sm:$0xff] %vm1606_vm2, %v1601_v8  ;;  %1665 = vst.msk [vmem:[%s2614_s6 + $0x1d0] sm:$0xff] %vm1606_vm2, %v1600_v7  ;;  %v1538_v21 = vadd.f32 %v2601_v6, %v1467_v30  ;;  %v1392_v19 = vadd.f32 %v1391_v9, %v2583_v48 }
 0x1d9   : > { %v1588_v31 = vmax.f32 %v1524_v34, 0.0  ;;  %v1603_v41 = vmax.f32 %v1539_v40, 0.0  ;;  %v1454_v20 = vmul.f32 %v2594_v59, %v1317_v11  ;;  %v1470_v62 = vmul.f32 %v2594_v59, %v1397_v45 }
 0x1da   : > { %v1602_v22 = vmax.f32 %v1538_v21, 0.0  ;;  %v1469_v52 = vmul.f32 %v2594_v59, %v1392_v19 }
 0x1db   : > { %1653 = vst.msk [vmem:[%s2614_s6 + $0x170] sm:$0xff] %vm1606_vm2, %v1588_v31  ;;  %1668 = vst.msk [vmem:[%s2614_s6 + $0x1e8] sm:$0xff] %vm1606_vm2, %v1603_v41  ;;  %v1525_v16 = vadd.f32 %v2601_v6, %v1454_v20  ;;  %v1541_v48 = vadd.f32 %v2601_v6, %v1470_v62 }
 0x1dc   : > { %1667 = vst.msk [vmem:[%s2614_s6 + $0x1e0] sm:$0xff] %vm1606_vm2, %v1602_v22  ;;  %v1540_v35 = vadd.f32 %v2601_v6, %v1469_v52 }
 0x1dd   : > { %v1589_v60 = vmax.f32 %v1525_v16, 0.0  ;;  %v1605_v17 = vmax.f32 %v1541_v48, 0.0 }
 0x1de   : > { %v1604_v56 = vmax.f32 %v1540_v35, 0.0 }
 0x1df   : > { %1654 = vst.msk [vmem:[%s2614_s6 + $0x178] sm:$0xff] %vm1606_vm2, %v1589_v60  ;;  %1670 = vst.msk [vmem:[%s2614_s6 + $0x1f8] sm:$0xff] %vm1606_vm2, %v1605_v17 }
 0x1e0   : > { %1669 = vst.msk [vmem:[%s2614_s6 + $0x1f0] sm:$0xff] %vm1606_vm2, %v1604_v56 }
 0x1e1 PF: > { %s14_s15 = sadd.s32 1, %s2084_s15  }
 0x1e2   : > { %p11_p4 = scmp.ge.s32.totalorder %s14_s15, 18  }
 0x1e4   :  { %13 = sbr.rel (!%p11_p4) target bundleno = 1 (0x1), region = 66 }

</bundles_post_ra>
